<compile_context>
chip_gen: v7x
topology: tpu7x:2x2x1
jax: 0.10.0
libtpu: 0.0.40
codegen_flags: <defaults>
</compile_context>

<pallas_src>
import functools

import jax
import jax.numpy as jnp
from jax import lax
from jax.experimental import pallas as pl
from jax.experimental.pallas import tpu as pltpu


def _round_up(x, m):
    return (x + m - 1) // m * m


# --------------- Phase A: input projection (time-parallel) -------------------
def _in_proj_kernel(x_ref, wx_ref, bg_ref, gx_ref):
    gx_ref[...] = (
        jnp.dot(x_ref[...], wx_ref[...], preferred_element_type=jnp.float32)
        + bg_ref[...])


# --------------- Phase C: output projection + log-softmax --------------------
def _out_proj_kernel(h_ref, wo_ref, bo_ref, out_ref):
    logits = (jnp.dot(h_ref[...], wo_ref[...],
                      preferred_element_type=jnp.float32) + bo_ref[...])
    # stable log-softmax over the lane (output-feature) axis; padded lanes
    # carry a -1e30 bias so they never win the max and exp() -> 0.
    m = jnp.max(logits, axis=-1, keepdims=True)
    z = logits - m
    lse = jnp.log(jnp.sum(jnp.exp(z), axis=-1, keepdims=True))
    out_ref[...] = (z - lse).astype(out_ref.dtype)


# --------------- Phase B: the recurrence (sequential) -------------------------
def _recur_kernel(gx_ref, h0_ref, c0_ref, wh_ref,
                  hseq_ref, hfin_ref, cfin_ref,
                  *, tchunk, t_total, needs_mask):
    chunk = pl.program_id(0)

    # Seed the VMEM-resident final-h / final-c output blocks (they double as
    # the recurrent carry across grid steps) from the initial state.
    @pl.when(chunk == 0)
    def _():
        hfin_ref[...] = h0_ref[...]
        cfin_ref[...] = c0_ref[...]

    wh = wh_ref[...]                       # (Cp, Cp) bf16, VMEM-resident
    h0 = hfin_ref[...]                     # (Bp, Cp) f32 carry
    c0 = cfin_ref[...]

    def step(i, carry):
        h, c = carry
        # gate pre-activation: x-part precomputed (Phase A); only h@Wh here.
        g = gx_ref[i] + jnp.dot(h.astype(jnp.bfloat16), wh,
                                preferred_element_type=jnp.float32)
        s = jax.nn.sigmoid(g)              # f_gate == i_gate == o_gate
        c_new = c * s + jnp.tanh(g) * s
        h_new = jnp.tanh(c_new) * s
        hseq_ref[i] = h_new.astype(hseq_ref.dtype)   # stream bf16 h_t out
        if needs_mask:                     # only compiled when T % TCHUNK != 0
            valid = (chunk * tchunk + i) < t_total
            h_new = jnp.where(valid, h_new, h)
            c_new = jnp.where(valid, c_new, c)
        return h_new, c_new

    h, c = lax.fori_loop(0, tchunk, step, (h0, c0), unroll=True)
    hfin_ref[...] = h
    cfin_ref[...] = c


@jax.jit
def lstm_forward_seq(xs, h0, c0, w_gate, b_gate, w_out, b_out):
    """Run the LSTM cell over a sequence.

    xs: (T, B, I); h0: (B, H); c0: (B, C) with H == C.
    w_gate: (I+H, C); b_gate: (C,); w_out: (H, O); b_out: (O,).
    Returns (log-softmax outputs (T, B, O), final hidden (B, H), final cell (B, C)).
    """
    T, B, I = xs.shape
    H = h0.shape[1]
    C = c0.shape[1]
    O = w_out.shape[1]
    assert H == C, "module implicitly requires hidden_size == cell_size"

    TCHUNK = min(T, 16)                    # timesteps per grid step (8-32 sweet spot)
    Tp = _round_up(T, TCHUNK)
    Bp = _round_up(B, 8)
    Ip = _round_up(I, 128)
    Cp = _round_up(C, 128)                 # NOTE: use 256 for real sizes on v6e/v7x
    Op = _round_up(O, 128)

    f32, bf16 = jnp.float32, jnp.bfloat16

    # split gate weight into x- and h- halves, zero-pad, cast to bf16
    w_x = jnp.zeros((Ip, Cp), f32).at[:I, :C].set(w_gate[:I]).astype(bf16)
    w_h = jnp.zeros((Cp, Cp), f32).at[:H, :C].set(w_gate[I:]).astype(bf16)
    b_g = jnp.zeros((1, Cp), f32).at[:, :C].set(b_gate.reshape(1, C))
    w_o = jnp.zeros((Cp, Op), f32).at[:H, :O].set(w_out).astype(bf16)
    # padded output lanes get a huge negative bias -> excluded from log-softmax
    b_o = jnp.full((1, Op), -1e30, f32).at[:, :O].set(b_out.reshape(1, O))

    xs_flat = (jnp.zeros((Tp, Bp, Ip), f32).at[:T, :B, :I].set(xs)
               .astype(bf16).reshape(Tp * Bp, Ip))
    h0_p = jnp.zeros((Bp, Cp), f32).at[:B, :H].set(h0)
    c0_p = jnp.zeros((Bp, Cp), f32).at[:B, :C].set(c0)

    n_chunks = Tp // TCHUNK
    M = Tp * Bp
    TM = TCHUNK * Bp
    const2 = lambda i: (0, 0)              # resident blocks (DMA'd once)

    params_par = pltpu.CompilerParams(
        dimension_semantics=("parallel",), vmem_limit_bytes=32 * 1024 * 1024)
    params_seq = pltpu.CompilerParams(
        dimension_semantics=("arbitrary",), vmem_limit_bytes=32 * 1024 * 1024)

    # ---- Phase A: g_x = x @ Wx + b (one big MXU matmul, time-parallel) ------
    gx = pl.pallas_call(
        _in_proj_kernel,
        out_shape=jax.ShapeDtypeStruct((M, Cp), f32),
        grid_spec=pltpu.PrefetchScalarGridSpec(
            num_scalar_prefetch=0,
            grid=(n_chunks,),
            in_specs=[
                pl.BlockSpec((TM, Ip), lambda i: (i, 0)),   # x rows (streamed)
                pl.BlockSpec((Ip, Cp), const2),             # Wx
                pl.BlockSpec((1, Cp), const2),              # b_gate
            ],
            out_specs=pl.BlockSpec((TM, Cp), lambda i: (i, 0)),
        ),
        compiler_params=params_par,
    )(xs_flat, w_x, b_g)
    gx3 = gx.reshape(Tp, Bp, Cp)

    # ---- Phase B: the recurrence (TCHUNK timesteps per grid step) -----------
    recur = functools.partial(_recur_kernel, tchunk=TCHUNK, t_total=T,
                              needs_mask=(Tp != T))
    h_seq, h_fin, c_fin = pl.pallas_call(
        recur,
        out_shape=(
            jax.ShapeDtypeStruct((Tp, Bp, Cp), bf16),   # per-step hidden (bf16)
            jax.ShapeDtypeStruct((Bp, Cp), f32),        # final hidden
            jax.ShapeDtypeStruct((Bp, Cp), f32),        # final cell
        ),
        grid_spec=pltpu.PrefetchScalarGridSpec(
            num_scalar_prefetch=0,
            grid=(n_chunks,),
            in_specs=[
                pl.BlockSpec((TCHUNK, Bp, Cp), lambda s: (s, 0, 0)),  # g_x chunk
                pl.BlockSpec((Bp, Cp), const2),                       # h0
                pl.BlockSpec((Bp, Cp), const2),                       # c0
                pl.BlockSpec((Cp, Cp), const2),                       # Wh
            ],
            out_specs=(
                pl.BlockSpec((TCHUNK, Bp, Cp), lambda s: (s, 0, 0)),  # h_t chunk
                pl.BlockSpec((Bp, Cp), const2),                       # final h
                pl.BlockSpec((Bp, Cp), const2),                       # final c
            ),
        ),
        input_output_aliases={1: 1, 2: 2},   # h0 -> final h, c0 -> final c
        compiler_params=params_seq,
    )(gx3, h0_p, c0_p, w_h)

    # ---- Phase C: output projection + log-softmax (time-parallel) -----------
    h_flat = h_seq.reshape(M, Cp)
    out_flat = pl.pallas_call(
        _out_proj_kernel,
        out_shape=jax.ShapeDtypeStruct((M, Op), f32),
        grid_spec=pltpu.PrefetchScalarGridSpec(
            num_scalar_prefetch=0,
            grid=(n_chunks,),
            in_specs=[
                pl.BlockSpec((TM, Cp), lambda i: (i, 0)),   # h rows (streamed)
                pl.BlockSpec((Cp, Op), const2),             # Wo
                pl.BlockSpec((1, Op), const2),              # b_out (+ lane mask)
            ],
            out_specs=pl.BlockSpec((TM, Op), lambda i: (i, 0)),
        ),
        compiler_params=params_par,
    )(h_flat, w_o, b_o)

    out = out_flat.reshape(Tp, Bp, Op)
    return out[:T, :B, :O], h_fin[:B, :H], c_fin[:B, :C]


def lstm_step(x, hidden, cell, w_gate, b_gate, w_out, b_out):
    """Exact single-step equivalent of the PyTorch module's forward()."""
    out, h, c = lstm_forward_seq(x[None], hidden, cell,
                                 w_gate, b_gate, w_out, b_out)
    return out[0], h, c


def _reference_seq(xs, h, c, w_gate, b_gate, w_out, b_out):
    outs = []
    for t in range(xs.shape[0]):
        combined = jnp.concatenate([xs[t], h], axis=1)
        g = combined @ w_gate + b_gate
        s = jax.nn.sigmoid(g)
        c = c * s + jnp.tanh(g) * s
        h = jnp.tanh(c) * s
        outs.append(jax.nn.log_softmax(h @ w_out + b_out, axis=1))
    return jnp.stack(outs), h, c


if __name__ == "__main__":
    input_size, hidden_size, cell_size, output_size = 16, 32, 32, 8
    batch, seq = 2, 8

    key = jax.random.PRNGKey(0)
    k1, k2, k3, k4, k5, k6, k7 = jax.random.split(key, 7)

    # deterministic parameter init (PyTorch-Linear-style uniform bounds)
    bound_g = 1.0 / jnp.sqrt(input_size + hidden_size)
    bound_o = 1.0 / jnp.sqrt(hidden_size)
    w_gate = jax.random.uniform(k1, (input_size + hidden_size, cell_size),
                                jnp.float32, -bound_g, bound_g)
    b_gate = jax.random.uniform(k2, (cell_size,), jnp.float32, -bound_g, bound_g)
    w_out = jax.random.uniform(k3, (hidden_size, output_size),
                               jnp.float32, -bound_o, bound_o)
    b_out = jax.random.uniform(k4, (output_size,), jnp.float32, -bound_o, bound_o)

    xs = jax.random.normal(k5, (seq, batch, input_size), jnp.float32)
    hidden = jax.random.normal(k6, (batch, hidden_size), jnp.float32)
    cell = jax.random.normal(k7, (batch, cell_size), jnp.float32)

    out, h_new, c_new = lstm_forward_seq(xs, hidden, cell,
                                         w_gate, b_gate, w_out, b_out)
    jax.block_until_ready((out, h_new, c_new))

    out_ref, h_ref, c_ref = _reference_seq(xs, hidden, cell,
                                           w_gate, b_gate, w_out, b_out)
    # bf16 MXU operands over an 8-step recurrence vs a pure-f32 reference.
    assert jnp.allclose(out, out_ref, atol=5e-2), "output mismatch"
    assert jnp.allclose(h_new, h_ref, atol=5e-2), "hidden mismatch"
    assert jnp.allclose(c_new, c_ref, atol=5e-2), "cell mismatch"

    print("KERNEL_OK")
</pallas_src>

<mosaic_0001>
module attributes {stable_mosaic.version = 11 : i64} {
  func.func @_in_proj_kernel(%arg0: i32, %arg1: memref<64x128xbf16, #tpu.memory_space<vmem>>, %arg2: memref<128x128xbf16, #tpu.memory_space<vmem>>, %arg3: memref<1x128xf32, #tpu.memory_space<vmem>>, %arg4: memref<64x128xf32, #tpu.memory_space<vmem>>) attributes {dimension_semantics = [#tpu.dimension_semantics<parallel>], iteration_bounds = array<i64: 1>, scalar_prefetch = 0 : i64, scratch_operands = 0 : i64, tpu.core_type = #tpu.core_type<tc>, window_params = [{transform_indices = @transform_0, window_bounds = array<i64: 64, 128>}, {pipeline_mode = #tpu.pipeline_mode<synchronous>, transform_indices = @transform_1, window_bounds = array<i64: 128, 128>}, {pipeline_mode = #tpu.pipeline_mode<synchronous>, transform_indices = @transform_2, window_bounds = array<i64: 1, 128>}, {transform_indices = @transform_3, window_bounds = array<i64: 64, 128>}]} {
    %c0 = arith.constant 0 : index
    %c0_0 = arith.constant 0 : index
    %0 = vector.load %arg1[%c0, %c0_0] : memref<64x128xbf16, #tpu.memory_space<vmem>>, vector<64x128xbf16>
    %c0_1 = arith.constant 0 : index
    %c0_2 = arith.constant 0 : index
    %1 = vector.load %arg2[%c0_1, %c0_2] : memref<128x128xbf16, #tpu.memory_space<vmem>>, vector<128x128xbf16>
    %cst = arith.constant dense<0.000000e+00> : vector<64x128xf32>
    %2 = tpu.matmul %0, %1, %cst {dimension_numbers = #tpu.dot_dimension_numbers<[1], [0], [0], [1], [0, 0, 1, 1], [], []>} : vector<64x128xbf16>, vector<128x128xbf16>, vector<64x128xf32> -> vector<64x128xf32>
    %c0_3 = arith.constant 0 : index
    %c0_4 = arith.constant 0 : index
    %3 = vector.load %arg3[%c0_3, %c0_4] : memref<1x128xf32, #tpu.memory_space<vmem>>, vector<1x128xf32>
    %4 = vector.broadcast %3 : vector<1x128xf32> to vector<64x128xf32>
    %5 = arith.addf %2, %4 : vector<64x128xf32>
    %c0_5 = arith.constant 0 : index
    %c0_6 = arith.constant 0 : index
    %6 = vector.load %arg4[%c0_5, %c0_6] : memref<64x128xf32, #tpu.memory_space<vmem>>, vector<64x128xf32>
    tpu.vector_store %arg4[%c0_5, %c0_6], %5 {strides = array<i32>} : memref<64x128xf32, #tpu.memory_space<vmem>>, vector<64x128xf32>,
    return
  }
  func.func @transform_0(%arg0: i32) -> (i32, i32) {
    %c0_i32 = arith.constant 0 : i32
    %c0_i32_0 = arith.constant 0 : i32
    return %arg0, %c0_i32 : i32, i32
  }
  func.func @transform_1(%arg0: i32) -> (i32, i32) {
    %c0_i32 = arith.constant 0 : i32
    %c0_i32_0 = arith.constant 0 : i32
    %c0_i32_1 = arith.constant 0 : i32
    return %c0_i32, %c0_i32_0 : i32, i32
  }
  func.func @transform_2(%arg0: i32) -> (i32, i32) {
    %c0_i32 = arith.constant 0 : i32
    %c0_i32_0 = arith.constant 0 : i32
    %c0_i32_1 = arith.constant 0 : i32
    return %c0_i32, %c0_i32_0 : i32, i32
  }
  func.func @transform_3(%arg0: i32) -> (i32, i32) {
    %c0_i32 = arith.constant 0 : i32
    %c0_i32_0 = arith.constant 0 : i32
    return %arg0, %c0_i32 : i32, i32
  }
}

module attributes {stable_mosaic.version = 11 : i64} {
  func.func @_recur_kernel(%arg0: i32, %arg1: memref<8x8x128xf32, #tpu.memory_space<vmem>>, %arg2: memref<8x128xf32, #tpu.memory_space<vmem>>, %arg3: memref<8x128xf32, #tpu.memory_space<vmem>>, %arg4: memref<128x128xbf16, #tpu.memory_space<vmem>>, %arg5: memref<8x8x128xbf16, #tpu.memory_space<vmem>>, %arg6: memref<8x128xf32, #tpu.memory_space<vmem>>, %arg7: memref<8x128xf32, #tpu.memory_space<vmem>>) attributes {dimension_semantics = [#tpu.dimension_semantics<arbitrary>], iteration_bounds = array<i64: 1>, scalar_prefetch = 0 : i64, scratch_operands = 0 : i64, tpu.core_type = #tpu.core_type<tc>, window_params = [{transform_indices = @transform_0, window_bounds = array<i64: 8, 8, 128>}, {pipeline_mode = #tpu.pipeline_mode<synchronous>, transform_indices = @transform_1, window_bounds = array<i64: 8, 128>}, {pipeline_mode = #tpu.pipeline_mode<synchronous>, transform_indices = @transform_2, window_bounds = array<i64: 8, 128>}, {pipeline_mode = #tpu.pipeline_mode<synchronous>, transform_indices = @transform_3, window_bounds = array<i64: 128, 128>}, {transform_indices = @transform_4, window_bounds = array<i64: 8, 8, 128>}, {pipeline_mode = #tpu.pipeline_mode<synchronous>, transform_indices = @transform_5, window_bounds = array<i64: 8, 128>}, {pipeline_mode = #tpu.pipeline_mode<synchronous>, transform_indices = @transform_6, window_bounds = array<i64: 8, 128>}]} {
    %c0_i32 = arith.constant 0 : i32
    %0 = arith.cmpi eq, %arg0, %c0_i32 : i32
    %1 = arith.extui %0 : i1 to i32
    %c0_i32_0 = arith.constant 0 : i32
    %2 = arith.cmpi ne, %1, %c0_i32_0 : i32
    scf.if %2 {
      %c0_58 = arith.constant 0 : index
      %c0_59 = arith.constant 0 : index
      %184 = vector.load %arg2[%c0_58, %c0_59] : memref<8x128xf32, #tpu.memory_space<vmem>>, vector<8x128xf32>
      %c0_60 = arith.constant 0 : index
      %c0_61 = arith.constant 0 : index
      %185 = vector.load %arg6[%c0_60, %c0_61] : memref<8x128xf32, #tpu.memory_space<vmem>>, vector<8x128xf32>
      tpu.vector_store %arg6[%c0_60, %c0_61], %184 {strides = array<i32>} : memref<8x128xf32, #tpu.memory_space<vmem>>, vector<8x128xf32>,
      %c0_62 = arith.constant 0 : index
      %c0_63 = arith.constant 0 : index
      %186 = vector.load %arg3[%c0_62, %c0_63] : memref<8x128xf32, #tpu.memory_space<vmem>>, vector<8x128xf32>
      %c0_64 = arith.constant 0 : index
      %c0_65 = arith.constant 0 : index
      %187 = vector.load %arg7[%c0_64, %c0_65] : memref<8x128xf32, #tpu.memory_space<vmem>>, vector<8x128xf32>
      tpu.vector_store %arg7[%c0_64, %c0_65], %186 {strides = array<i32>} : memref<8x128xf32, #tpu.memory_space<vmem>>, vector<8x128xf32>,
    } else {
    }
    %c0 = arith.constant 0 : index
    %c0_1 = arith.constant 0 : index
    %3 = vector.load %arg4[%c0, %c0_1] : memref<128x128xbf16, #tpu.memory_space<vmem>>, vector<128x128xbf16>
    %c0_2 = arith.constant 0 : index
    %c0_3 = arith.constant 0 : index
    %4 = vector.load %arg6[%c0_2, %c0_3] : memref<8x128xf32, #tpu.memory_space<vmem>>, vector<8x128xf32>
    %c0_4 = arith.constant 0 : index
    %c0_5 = arith.constant 0 : index
    %5 = vector.load %arg7[%c0_4, %c0_5] : memref<8x128xf32, #tpu.memory_space<vmem>>, vector<8x128xf32>
    %c0_i32_6 = arith.constant 0 : i32
    %6 = arith.index_cast %c0_i32_6 : i32 to index
    %c0_7 = arith.constant 0 : index
    %c0_8 = arith.constant 0 : index
    %7 = vector.load %arg1[%6, %c0_7, %c0_8] : memref<8x8x128xf32, #tpu.memory_space<vmem>>, vector<1x8x128xf32>
    %8 = vector.shape_cast %7 : vector<1x8x128xf32> to vector<8x128xf32>
    %9 = arith.truncf %4 : vector<8x128xf32> to vector<8x128xbf16>
    %cst = arith.constant dense<0.000000e+00> : vector<8x128xf32>
    %10 = tpu.matmul %9, %3, %cst {dimension_numbers = #tpu.dot_dimension_numbers<[1], [0], [0], [1], [0, 0, 1, 1], [], []>} : vector<8x128xbf16>, vector<128x128xbf16>, vector<8x128xf32> -> vector<8x128xf32>
    %11 = arith.addf %8, %10 : vector<8x128xf32>
    %12 = arith.negf %11 : vector<8x128xf32>
    %13 = math.exp %12 : vector<8x128xf32>
    %cst_9 = arith.constant 1.000000e+00 : f32
    %14 = vector.broadcast %cst_9 : f32 to vector<8x128xf32>
    %15 = arith.addf %14, %13 : vector<8x128xf32>
    %16 = arith.divf %14, %15 : vector<8x128xf32>
    %17 = arith.mulf %5, %16 : vector<8x128xf32>
    %18 = math.tanh %11 : vector<8x128xf32>
    %19 = arith.mulf %18, %16 : vector<8x128xf32>
    %20 = arith.addf %17, %19 : vector<8x128xf32>
    %21 = math.tanh %20 : vector<8x128xf32>
    %22 = arith.mulf %21, %16 : vector<8x128xf32>
    %23 = arith.truncf %22 : vector<8x128xf32> to vector<8x128xbf16>
    %24 = arith.index_cast %c0_i32_6 : i32 to index
    %c0_10 = arith.constant 0 : index
    %c0_11 = arith.constant 0 : index
    %25 = vector.load %arg5[%24, %c0_10, %c0_11] : memref<8x8x128xbf16, #tpu.memory_space<vmem>>, vector<1x8x128xbf16>
    %26 = vector.shape_cast %25 : vector<1x8x128xbf16> to vector<8x128xbf16>
    %27 = vector.shape_cast %23 : vector<8x128xbf16> to vector<1x8x128xbf16>
    tpu.vector_store %arg5[%24, %c0_10, %c0_11], %27 {strides = array<i32>} : memref<8x8x128xbf16, #tpu.memory_space<vmem>>, vector<1x8x128xbf16>,
    %c1_i32 = arith.constant 1 : i32
    %28 = arith.index_cast %c1_i32 : i32 to index
    %c0_12 = arith.constant 0 : index
    %c0_13 = arith.constant 0 : index
    %29 = vector.load %arg1[%28, %c0_12, %c0_13] : memref<8x8x128xf32, #tpu.memory_space<vmem>>, vector<1x8x128xf32>
    %30 = vector.shape_cast %29 : vector<1x8x128xf32> to vector<8x128xf32>
    %31 = arith.truncf %22 : vector<8x128xf32> to vector<8x128xbf16>
    %cst_14 = arith.constant dense<0.000000e+00> : vector<8x128xf32>
    %32 = tpu.matmul %31, %3, %cst_14 {dimension_numbers = #tpu.dot_dimension_numbers<[1], [0], [0], [1], [0, 0, 1, 1], [], []>} : vector<8x128xbf16>, vector<128x128xbf16>, vector<8x128xf32> -> vector<8x128xf32>
    %33 = arith.addf %30, %32 : vector<8x128xf32>
    %34 = arith.negf %33 : vector<8x128xf32>
    %35 = math.exp %34 : vector<8x128xf32>
    %cst_15 = arith.constant 1.000000e+00 : f32
    %36 = vector.broadcast %cst_15 : f32 to vector<8x128xf32>
    %37 = arith.addf %36, %35 : vector<8x128xf32>
    %38 = arith.divf %36, %37 : vector<8x128xf32>
    %39 = arith.mulf %20, %38 : vector<8x128xf32>
    %40 = math.tanh %33 : vector<8x128xf32>
    %41 = arith.mulf %40, %38 : vector<8x128xf32>
    %42 = arith.addf %39, %41 : vector<8x128xf32>
    %43 = math.tanh %42 : vector<8x128xf32>
    %44 = arith.mulf %43, %38 : vector<8x128xf32>
    %45 = arith.truncf %44 : vector<8x128xf32> to vector<8x128xbf16>
    %46 = arith.index_cast %c1_i32 : i32 to index
    %c0_16 = arith.constant 0 : index
    %c0_17 = arith.constant 0 : index
    %47 = vector.load %arg5[%46, %c0_16, %c0_17] : memref<8x8x128xbf16, #tpu.memory_space<vmem>>, vector<1x8x128xbf16>
    %48 = vector.shape_cast %47 : vector<1x8x128xbf16> to vector<8x128xbf16>
    %49 = vector.shape_cast %45 : vector<8x128xbf16> to vector<1x8x128xbf16>
    tpu.vector_store %arg5[%46, %c0_16, %c0_17], %49 {strides = array<i32>} : memref<8x8x128xbf16, #tpu.memory_space<vmem>>, vector<1x8x128xbf16>,
    %c2_i32 = arith.constant 2 : i32
    %50 = arith.index_cast %c2_i32 : i32 to index
    %c0_18 = arith.constant 0 : index
    %c0_19 = arith.constant 0 : index
    %51 = vector.load %arg1[%50, %c0_18, %c0_19] : memref<8x8x128xf32, #tpu.memory_space<vmem>>, vector<1x8x128xf32>
    %52 = vector.shape_cast %51 : vector<1x8x128xf32> to vector<8x128xf32>
    %53 = arith.truncf %44 : vector<8x128xf32> to vector<8x128xbf16>
    %cst_20 = arith.constant dense<0.000000e+00> : vector<8x128xf32>
    %54 = tpu.matmul %53, %3, %cst_20 {dimension_numbers = #tpu.dot_dimension_numbers<[1], [0], [0], [1], [0, 0, 1, 1], [], []>} : vector<8x128xbf16>, vector<128x128xbf16>, vector<8x128xf32> -> vector<8x128xf32>
    %55 = arith.addf %52, %54 : vector<8x128xf32>
    %56 = arith.negf %55 : vector<8x128xf32>
    %57 = math.exp %56 : vector<8x128xf32>
    %cst_21 = arith.constant 1.000000e+00 : f32
    %58 = vector.broadcast %cst_21 : f32 to vector<8x128xf32>
    %59 = arith.addf %58, %57 : vector<8x128xf32>
    %60 = arith.divf %58, %59 : vector<8x128xf32>
    %61 = arith.mulf %42, %60 : vector<8x128xf32>
    %62 = math.tanh %55 : vector<8x128xf32>
    %63 = arith.mulf %62, %60 : vector<8x128xf32>
    %64 = arith.addf %61, %63 : vector<8x128xf32>
    %65 = math.tanh %64 : vector<8x128xf32>
    %66 = arith.mulf %65, %60 : vector<8x128xf32>
    %67 = arith.truncf %66 : vector<8x128xf32> to vector<8x128xbf16>
    %68 = arith.index_cast %c2_i32 : i32 to index
    %c0_22 = arith.constant 0 : index
    %c0_23 = arith.constant 0 : index
    %69 = vector.load %arg5[%68, %c0_22, %c0_23] : memref<8x8x128xbf16, #tpu.memory_space<vmem>>, vector<1x8x128xbf16>
    %70 = vector.shape_cast %69 : vector<1x8x128xbf16> to vector<8x128xbf16>
    %71 = vector.shape_cast %67 : vector<8x128xbf16> to vector<1x8x128xbf16>
    tpu.vector_store %arg5[%68, %c0_22, %c0_23], %71 {strides = array<i32>} : memref<8x8x128xbf16, #tpu.memory_space<vmem>>, vector<1x8x128xbf16>,
    %c3_i32 = arith.constant 3 : i32
    %72 = arith.index_cast %c3_i32 : i32 to index
    %c0_24 = arith.constant 0 : index
    %c0_25 = arith.constant 0 : index
    %73 = vector.load %arg1[%72, %c0_24, %c0_25] : memref<8x8x128xf32, #tpu.memory_space<vmem>>, vector<1x8x128xf32>
    %74 = vector.shape_cast %73 : vector<1x8x128xf32> to vector<8x128xf32>
    %75 = arith.truncf %66 : vector<8x128xf32> to vector<8x128xbf16>
    %cst_26 = arith.constant dense<0.000000e+00> : vector<8x128xf32>
    %76 = tpu.matmul %75, %3, %cst_26 {dimension_numbers = #tpu.dot_dimension_numbers<[1], [0], [0], [1], [0, 0, 1, 1], [], []>} : vector<8x128xbf16>, vector<128x128xbf16>, vector<8x128xf32> -> vector<8x128xf32>
    %77 = arith.addf %74, %76 : vector<8x128xf32>
    %78 = arith.negf %77 : vector<8x128xf32>
    %79 = math.exp %78 : vector<8x128xf32>
    %cst_27 = arith.constant 1.000000e+00 : f32
    %80 = vector.broadcast %cst_27 : f32 to vector<8x128xf32>
    %81 = arith.addf %80, %79 : vector<8x128xf32>
    %82 = arith.divf %80, %81 : vector<8x128xf32>
    %83 = arith.mulf %64, %82 : vector<8x128xf32>
    %84 = math.tanh %77 : vector<8x128xf32>
    %85 = arith.mulf %84, %82 : vector<8x128xf32>
    %86 = arith.addf %83, %85 : vector<8x128xf32>
    %87 = math.tanh %86 : vector<8x128xf32>
    %88 = arith.mulf %87, %82 : vector<8x128xf32>
    %89 = arith.truncf %88 : vector<8x128xf32> to vector<8x128xbf16>
    %90 = arith.index_cast %c3_i32 : i32 to index
    %c0_28 = arith.constant 0 : index
    %c0_29 = arith.constant 0 : index
    %91 = vector.load %arg5[%90, %c0_28, %c0_29] : memref<8x8x128xbf16, #tpu.memory_space<vmem>>, vector<1x8x128xbf16>
    %92 = vector.shape_cast %91 : vector<1x8x128xbf16> to vector<8x128xbf16>
    %93 = vector.shape_cast %89 : vector<8x128xbf16> to vector<1x8x128xbf16>
    tpu.vector_store %arg5[%90, %c0_28, %c0_29], %93 {strides = array<i32>} : memref<8x8x128xbf16, #tpu.memory_space<vmem>>, vector<1x8x128xbf16>,
    %c4_i32 = arith.constant 4 : i32
    %94 = arith.index_cast %c4_i32 : i32 to index
    %c0_30 = arith.constant 0 : index
    %c0_31 = arith.constant 0 : index
    %95 = vector.load %arg1[%94, %c0_30, %c0_31] : memref<8x8x128xf32, #tpu.memory_space<vmem>>, vector<1x8x128xf32>
    %96 = vector.shape_cast %95 : vector<1x8x128xf32> to vector<8x128xf32>
    %97 = arith.truncf %88 : vector<8x128xf32> to vector<8x128xbf16>
    %cst_32 = arith.constant dense<0.000000e+00> : vector<8x128xf32>
    %98 = tpu.matmul %97, %3, %cst_32 {dimension_numbers = #tpu.dot_dimension_numbers<[1], [0], [0], [1], [0, 0, 1, 1], [], []>} : vector<8x128xbf16>, vector<128x128xbf16>, vector<8x128xf32> -> vector<8x128xf32>
    %99 = arith.addf %96, %98 : vector<8x128xf32>
    %100 = arith.negf %99 : vector<8x128xf32>
    %101 = math.exp %100 : vector<8x128xf32>
    %cst_33 = arith.constant 1.000000e+00 : f32
    %102 = vector.broadcast %cst_33 : f32 to vector<8x128xf32>
    %103 = arith.addf %102, %101 : vector<8x128xf32>
    %104 = arith.divf %102, %103 : vector<8x128xf32>
    %105 = arith.mulf %86, %104 : vector<8x128xf32>
    %106 = math.tanh %99 : vector<8x128xf32>
    %107 = arith.mulf %106, %104 : vector<8x128xf32>
    %108 = arith.addf %105, %107 : vector<8x128xf32>
    %109 = math.tanh %108 : vector<8x128xf32>
    %110 = arith.mulf %109, %104 : vector<8x128xf32>
    %111 = arith.truncf %110 : vector<8x128xf32> to vector<8x128xbf16>
    %112 = arith.index_cast %c4_i32 : i32 to index
    %c0_34 = arith.constant 0 : index
    %c0_35 = arith.constant 0 : index
    %113 = vector.load %arg5[%112, %c0_34, %c0_35] : memref<8x8x128xbf16, #tpu.memory_space<vmem>>, vector<1x8x128xbf16>
    %114 = vector.shape_cast %113 : vector<1x8x128xbf16> to vector<8x128xbf16>
    %115 = vector.shape_cast %111 : vector<8x128xbf16> to vector<1x8x128xbf16>
    tpu.vector_store %arg5[%112, %c0_34, %c0_35], %115 {strides = array<i32>} : memref<8x8x128xbf16, #tpu.memory_space<vmem>>, vector<1x8x128xbf16>,
    %c5_i32 = arith.constant 5 : i32
    %116 = arith.index_cast %c5_i32 : i32 to index
    %c0_36 = arith.constant 0 : index
    %c0_37 = arith.constant 0 : index
    %117 = vector.load %arg1[%116, %c0_36, %c0_37] : memref<8x8x128xf32, #tpu.memory_space<vmem>>, vector<1x8x128xf32>
    %118 = vector.shape_cast %117 : vector<1x8x128xf32> to vector<8x128xf32>
    %119 = arith.truncf %110 : vector<8x128xf32> to vector<8x128xbf16>
    %cst_38 = arith.constant dense<0.000000e+00> : vector<8x128xf32>
    %120 = tpu.matmul %119, %3, %cst_38 {dimension_numbers = #tpu.dot_dimension_numbers<[1], [0], [0], [1], [0, 0, 1, 1], [], []>} : vector<8x128xbf16>, vector<128x128xbf16>, vector<8x128xf32> -> vector<8x128xf32>
    %121 = arith.addf %118, %120 : vector<8x128xf32>
    %122 = arith.negf %121 : vector<8x128xf32>
    %123 = math.exp %122 : vector<8x128xf32>
    %cst_39 = arith.constant 1.000000e+00 : f32
    %124 = vector.broadcast %cst_39 : f32 to vector<8x128xf32>
    %125 = arith.addf %124, %123 : vector<8x128xf32>
    %126 = arith.divf %124, %125 : vector<8x128xf32>
    %127 = arith.mulf %108, %126 : vector<8x128xf32>
    %128 = math.tanh %121 : vector<8x128xf32>
    %129 = arith.mulf %128, %126 : vector<8x128xf32>
    %130 = arith.addf %127, %129 : vector<8x128xf32>
    %131 = math.tanh %130 : vector<8x128xf32>
    %132 = arith.mulf %131, %126 : vector<8x128xf32>
    %133 = arith.truncf %132 : vector<8x128xf32> to vector<8x128xbf16>
    %134 = arith.index_cast %c5_i32 : i32 to index
    %c0_40 = arith.constant 0 : index
    %c0_41 = arith.constant 0 : index
    %135 = vector.load %arg5[%134, %c0_40, %c0_41] : memref<8x8x128xbf16, #tpu.memory_space<vmem>>, vector<1x8x128xbf16>
    %136 = vector.shape_cast %135 : vector<1x8x128xbf16> to vector<8x128xbf16>
    %137 = vector.shape_cast %133 : vector<8x128xbf16> to vector<1x8x128xbf16>
    tpu.vector_store %arg5[%134, %c0_40, %c0_41], %137 {strides = array<i32>} : memref<8x8x128xbf16, #tpu.memory_space<vmem>>, vector<1x8x128xbf16>,
    %c6_i32 = arith.constant 6 : i32
    %138 = arith.index_cast %c6_i32 : i32 to index
    %c0_42 = arith.constant 0 : index
    %c0_43 = arith.constant 0 : index
    %139 = vector.load %arg1[%138, %c0_42, %c0_43] : memref<8x8x128xf32, #tpu.memory_space<vmem>>, vector<1x8x128xf32>
    %140 = vector.shape_cast %139 : vector<1x8x128xf32> to vector<8x128xf32>
    %141 = arith.truncf %132 : vector<8x128xf32> to vector<8x128xbf16>
    %cst_44 = arith.constant dense<0.000000e+00> : vector<8x128xf32>
    %142 = tpu.matmul %141, %3, %cst_44 {dimension_numbers = #tpu.dot_dimension_numbers<[1], [0], [0], [1], [0, 0, 1, 1], [], []>} : vector<8x128xbf16>, vector<128x128xbf16>, vector<8x128xf32> -> vector<8x128xf32>
    %143 = arith.addf %140, %142 : vector<8x128xf32>
    %144 = arith.negf %143 : vector<8x128xf32>
    %145 = math.exp %144 : vector<8x128xf32>
    %cst_45 = arith.constant 1.000000e+00 : f32
    %146 = vector.broadcast %cst_45 : f32 to vector<8x128xf32>
    %147 = arith.addf %146, %145 : vector<8x128xf32>
    %148 = arith.divf %146, %147 : vector<8x128xf32>
    %149 = arith.mulf %130, %148 : vector<8x128xf32>
    %150 = math.tanh %143 : vector<8x128xf32>
    %151 = arith.mulf %150, %148 : vector<8x128xf32>
    %152 = arith.addf %149, %151 : vector<8x128xf32>
    %153 = math.tanh %152 : vector<8x128xf32>
    %154 = arith.mulf %153, %148 : vector<8x128xf32>
    %155 = arith.truncf %154 : vector<8x128xf32> to vector<8x128xbf16>
    %156 = arith.index_cast %c6_i32 : i32 to index
    %c0_46 = arith.constant 0 : index
    %c0_47 = arith.constant 0 : index
    %157 = vector.load %arg5[%156, %c0_46, %c0_47] : memref<8x8x128xbf16, #tpu.memory_space<vmem>>, vector<1x8x128xbf16>
    %158 = vector.shape_cast %157 : vector<1x8x128xbf16> to vector<8x128xbf16>
    %159 = vector.shape_cast %155 : vector<8x128xbf16> to vector<1x8x128xbf16>
    tpu.vector_store %arg5[%156, %c0_46, %c0_47], %159 {strides = array<i32>} : memref<8x8x128xbf16, #tpu.memory_space<vmem>>, vector<1x8x128xbf16>,
    %c7_i32 = arith.constant 7 : i32
    %160 = arith.index_cast %c7_i32 : i32 to index
    %c0_48 = arith.constant 0 : index
    %c0_49 = arith.constant 0 : index
    %161 = vector.load %arg1[%160, %c0_48, %c0_49] : memref<8x8x128xf32, #tpu.memory_space<vmem>>, vector<1x8x128xf32>
    %162 = vector.shape_cast %161 : vector<1x8x128xf32> to vector<8x128xf32>
    %163 = arith.truncf %154 : vector<8x128xf32> to vector<8x128xbf16>
    %cst_50 = arith.constant dense<0.000000e+00> : vector<8x128xf32>
    %164 = tpu.matmul %163, %3, %cst_50 {dimension_numbers = #tpu.dot_dimension_numbers<[1], [0], [0], [1], [0, 0, 1, 1], [], []>} : vector<8x128xbf16>, vector<128x128xbf16>, vector<8x128xf32> -> vector<8x128xf32>
    %165 = arith.addf %162, %164 : vector<8x128xf32>
    %166 = arith.negf %165 : vector<8x128xf32>
    %167 = math.exp %166 : vector<8x128xf32>
    %cst_51 = arith.constant 1.000000e+00 : f32
    %168 = vector.broadcast %cst_51 : f32 to vector<8x128xf32>
    %169 = arith.addf %168, %167 : vector<8x128xf32>
    %170 = arith.divf %168, %169 : vector<8x128xf32>
    %171 = arith.mulf %152, %170 : vector<8x128xf32>
    %172 = math.tanh %165 : vector<8x128xf32>
    %173 = arith.mulf %172, %170 : vector<8x128xf32>
    %174 = arith.addf %171, %173 : vector<8x128xf32>
    %175 = math.tanh %174 : vector<8x128xf32>
    %176 = arith.mulf %175, %170 : vector<8x128xf32>
    %177 = arith.truncf %176 : vector<8x128xf32> to vector<8x128xbf16>
    %178 = arith.index_cast %c7_i32 : i32 to index
    %c0_52 = arith.constant 0 : index
    %c0_53 = arith.constant 0 : index
    %179 = vector.load %arg5[%178, %c0_52, %c0_53] : memref<8x8x128xbf16, #tpu.memory_space<vmem>>, vector<1x8x128xbf16>
    %180 = vector.shape_cast %179 : vector<1x8x128xbf16> to vector<8x128xbf16>
    %181 = vector.shape_cast %177 : vector<8x128xbf16> to vector<1x8x128xbf16>
    tpu.vector_store %arg5[%178, %c0_52, %c0_53], %181 {strides = array<i32>} : memref<8x8x128xbf16, #tpu.memory_space<vmem>>, vector<1x8x128xbf16>,
    %c8_i32 = arith.constant 8 : i32
    %c0_54 = arith.constant 0 : index
    %c0_55 = arith.constant 0 : index
    %182 = vector.load %arg6[%c0_54, %c0_55] : memref<8x128xf32, #tpu.memory_space<vmem>>, vector<8x128xf32>
    tpu.vector_store %arg6[%c0_54, %c0_55], %176 {strides = array<i32>} : memref<8x128xf32, #tpu.memory_space<vmem>>, vector<8x128xf32>,
    %c0_56 = arith.constant 0 : index
    %c0_57 = arith.constant 0 : index
    %183 = vector.load %arg7[%c0_56, %c0_57] : memref<8x128xf32, #tpu.memory_space<vmem>>, vector<8x128xf32>
    tpu.vector_store %arg7[%c0_56, %c0_57], %174 {strides = array<i32>} : memref<8x128xf32, #tpu.memory_space<vmem>>, vector<8x128xf32>,
    return
  }
  func.func @transform_0(%arg0: i32) -> (i32, i32, i32) {
    %c0_i32 = arith.constant 0 : i32
    %c0_i32_0 = arith.constant 0 : i32
    %c0_i32_1 = arith.constant 0 : i32
    return %arg0, %c0_i32, %c0_i32_0 : i32, i32, i32
  }
  func.func @transform_1(%arg0: i32) -> (i32, i32) {
    %c0_i32 = arith.constant 0 : i32
    %c0_i32_0 = arith.constant 0 : i32
    %c0_i32_1 = arith.constant 0 : i32
    return %c0_i32, %c0_i32_0 : i32, i32
  }
  func.func @transform_2(%arg0: i32) -> (i32, i32) {
    %c0_i32 = arith.constant 0 : i32
    %c0_i32_0 = arith.constant 0 : i32
    %c0_i32_1 = arith.constant 0 : i32
    return %c0_i32, %c0_i32_0 : i32, i32
  }
  func.func @transform_3(%arg0: i32) -> (i32, i32) {
    %c0_i32 = arith.constant 0 : i32
    %c0_i32_0 = arith.constant 0 : i32
    %c0_i32_1 = arith.constant 0 : i32
    return %c0_i32, %c0_i32_0 : i32, i32
  }
  func.func @transform_4(%arg0: i32) -> (i32, i32, i32) {
    %c0_i32 = arith.constant 0 : i32
    %c0_i32_0 = arith.constant 0 : i32
    %c0_i32_1 = arith.constant 0 : i32
    return %arg0, %c0_i32, %c0_i32_0 : i32, i32, i32
  }
  func.func @transform_5(%arg0: i32) -> (i32, i32) {
    %c0_i32 = arith.constant 0 : i32
    %c0_i32_0 = arith.constant 0 : i32
    %c0_i32_1 = arith.constant 0 : i32
    return %c0_i32, %c0_i32_0 : i32, i32
  }
  func.func @transform_6(%arg0: i32) -> (i32, i32) {
    %c0_i32 = arith.constant 0 : i32
    %c0_i32_0 = arith.constant 0 : i32
    %c0_i32_1 = arith.constant 0 : i32
    return %c0_i32, %c0_i32_0 : i32, i32
  }
}

module attributes {stable_mosaic.version = 11 : i64} {
  func.func @_out_proj_kernel(%arg0: i32, %arg1: memref<64x128xbf16, #tpu.memory_space<vmem>>, %arg2: memref<128x128xbf16, #tpu.memory_space<vmem>>, %arg3: memref<1x128xf32, #tpu.memory_space<vmem>>, %arg4: memref<64x128xf32, #tpu.memory_space<vmem>>) attributes {dimension_semantics = [#tpu.dimension_semantics<parallel>], iteration_bounds = array<i64: 1>, scalar_prefetch = 0 : i64, scratch_operands = 0 : i64, tpu.core_type = #tpu.core_type<tc>, window_params = [{transform_indices = @transform_0, window_bounds = array<i64: 64, 128>}, {pipeline_mode = #tpu.pipeline_mode<synchronous>, transform_indices = @transform_1, window_bounds = array<i64: 128, 128>}, {pipeline_mode = #tpu.pipeline_mode<synchronous>, transform_indices = @transform_2, window_bounds = array<i64: 1, 128>}, {transform_indices = @transform_3, window_bounds = array<i64: 64, 128>}]} {
    %c0 = arith.constant 0 : index
    %c0_0 = arith.constant 0 : index
    %0 = vector.load %arg1[%c0, %c0_0] : memref<64x128xbf16, #tpu.memory_space<vmem>>, vector<64x128xbf16>
    %c0_1 = arith.constant 0 : index
    %c0_2 = arith.constant 0 : index
    %1 = vector.load %arg2[%c0_1, %c0_2] : memref<128x128xbf16, #tpu.memory_space<vmem>>, vector<128x128xbf16>
    %cst = arith.constant dense<0.000000e+00> : vector<64x128xf32>
    %2 = tpu.matmul %0, %1, %cst {dimension_numbers = #tpu.dot_dimension_numbers<[1], [0], [0], [1], [0, 0, 1, 1], [], []>} : vector<64x128xbf16>, vector<128x128xbf16>, vector<64x128xf32> -> vector<64x128xf32>
    %c0_3 = arith.constant 0 : index
    %c0_4 = arith.constant 0 : index
    %3 = vector.load %arg3[%c0_3, %c0_4] : memref<1x128xf32, #tpu.memory_space<vmem>>, vector<1x128xf32>
    %4 = vector.broadcast %3 : vector<1x128xf32> to vector<64x128xf32>
    %5 = arith.addf %2, %4 : vector<64x128xf32>
    %cst_5 = arith.constant dense<0xFF800000> : vector<64xf32>
    %6 = vector.multi_reduction <maximumf>, %5, %cst_5 [1] : vector<64x128xf32> to vector<64xf32>
    %7 = vector.shape_cast %6 : vector<64xf32> to vector<64x1xf32>
    %8 = vector.broadcast %7 : vector<64x1xf32> to vector<64x128xf32>
    %9 = arith.subf %5, %8 : vector<64x128xf32>
    %10 = math.exp %9 : vector<64x128xf32>
    %cst_6 = arith.constant dense<0.000000e+00> : vector<64xf32>
    %11 = vector.multi_reduction <add>, %10, %cst_6 [1] : vector<64x128xf32> to vector<64xf32>
    %12 = vector.shape_cast %11 : vector<64xf32> to vector<64x1xf32>
    %13 = math.log %12 : vector<64x1xf32>
    %14 = vector.broadcast %13 : vector<64x1xf32> to vector<64x128xf32>
    %15 = arith.subf %9, %14 : vector<64x128xf32>
    %c0_7 = arith.constant 0 : index
    %c0_8 = arith.constant 0 : index
    %16 = vector.load %arg4[%c0_7, %c0_8] : memref<64x128xf32, #tpu.memory_space<vmem>>, vector<64x128xf32>
    tpu.vector_store %arg4[%c0_7, %c0_8], %15 {strides = array<i32>} : memref<64x128xf32, #tpu.memory_space<vmem>>, vector<64x128xf32>,
    return
  }
  func.func @transform_0(%arg0: i32) -> (i32, i32) {
    %c0_i32 = arith.constant 0 : i32
    %c0_i32_0 = arith.constant 0 : i32
    return %arg0, %c0_i32 : i32, i32
  }
  func.func @transform_1(%arg0: i32) -> (i32, i32) {
    %c0_i32 = arith.constant 0 : i32
    %c0_i32_0 = arith.constant 0 : i32
    %c0_i32_1 = arith.constant 0 : i32
    return %c0_i32, %c0_i32_0 : i32, i32
  }
  func.func @transform_2(%arg0: i32) -> (i32, i32) {
    %c0_i32 = arith.constant 0 : i32
    %c0_i32_0 = arith.constant 0 : i32
    %c0_i32_1 = arith.constant 0 : i32
    return %c0_i32, %c0_i32_0 : i32, i32
  }
  func.func @transform_3(%arg0: i32) -> (i32, i32) {
    %c0_i32 = arith.constant 0 : i32
    %c0_i32_0 = arith.constant 0 : i32
    return %arg0, %c0_i32 : i32, i32
  }
}

</mosaic_0001>

<bundles_post_ra>
// kernel: lstm_forward_seq.3
= control target key start
LH: loop header
LB: loop body
LE: loop exit
PB: predicated region body
PF: predicated region fallthrough
CT: control target
= control target key end

     0   :  { %s355_s1 = inlined_call_operand.vmem [shape: bf16[128,128], index: 1, kind: input, shape index: {}]   ;;  %s356_s0 = inlined_call_operand.vmem [shape: bf16[64,128], index: 0, kind: input, shape index: {}]   ;;  %s357_s2 = inlined_call_operand.vmem [shape: f32[1,128], index: 2, kind: input, shape index: {}]   ;;  %s358_s3 = inlined_call_operand.vmem [shape: f32[64,128], index: 3, kind: output, shape index: {}]  }
   0x1   :  { %v260_v0 = vld [vmem:[%s355_s1] sm:$0xff]   ;;  %v261_v1 = vld [vmem:[%s355_s1 + $0x8] sm:$0xff]   ;;  %v262_v2 = vld [vmem:[%s355_s1 + $0x10] sm:$0xff]  }
   0x2   :  { %220 = vmatprep.subr.bf16.mxu0 %v260_v0  ;;  %244 = vmatprep.subr.bf16.mxu1 %v260_v0  ;;  %v263_v3 = vld [vmem:[%s355_s1 + $0x18] sm:$0xff]   ;;  %v268_v4 = vld [vmem:[%s356_s0] sm:$0xff]   ;;  %v269_v5 = vld [vmem:[%s356_s0 + $0x10] sm:$0xff]  }
   0x3   :  { %221 = vmatpush3.bf16.msra.mxu0 %v260_v0  ;;  %252 = vmatpush3.bf16.msra.mxu1 %v260_v0  ;;  %v264_v6 = vld [vmem:[%s355_s1 + $0x20] sm:$0xff]   ;;  %v265_v7 = vld [vmem:[%s355_s1 + $0x28] sm:$0xff]   ;;  %v266_v8 = vld [vmem:[%s355_s1 + $0x30] sm:$0xff]  }
   0x4   :  { %222 = vmatprep.subr.bf16.mxu0 %v261_v1  ;;  %245 = vmatprep.subr.bf16.mxu1 %v261_v1  ;;  %v267_v9 = vld [vmem:[%s355_s1 + $0x38] sm:$0xff]   ;;  %v270_v10 = vld [vmem:[%s356_s0 + $0x8] sm:$0xff]   ;;  %v195_v12 = vld [vmem:[%s357_s2] ss:$0 sm:$0xff] }
   0x5   :  { %236 = vmatprep.mubr.bf16.mxu0 %v268_v4  ;;  %240 = vmatprep.mubr.bf16.mxu1 %v269_v5  ;;  %v271_v11 = vld [vmem:[%s356_s0 + $0x18] sm:$0xff]  }
   0x7   :  { %223 = vmatpush3.bf16.msra.mxu0 %v261_v1  ;;  %253 = vmatpush3.bf16.msra.mxu1 %v261_v1 }
   0x8   :  { %224 = vmatprep.subr.bf16.mxu0 %v262_v2  ;;  %246 = vmatprep.subr.bf16.mxu1 %v262_v2 }
   0xb   :  { %225 = vmatpush3.bf16.msra.mxu0 %v262_v2  ;;  %254 = vmatpush3.bf16.msra.mxu1 %v262_v2 }
   0xc   :  { %226 = vmatprep.subr.bf16.mxu0 %v263_v3  ;;  %247 = vmatprep.subr.bf16.mxu1 %v263_v3 }
   0xf   :  { %227 = vmatpush3.bf16.msra.mxu0 %v263_v3  ;;  %255 = vmatpush3.bf16.msra.mxu1 %v263_v3 }
  0x10   :  { %228 = vmatprep.subr.bf16.mxu0 %v264_v6  ;;  %248 = vmatprep.subr.bf16.mxu1 %v264_v6 }
  0x13   :  { %229 = vmatpush3.bf16.msra.mxu0 %v264_v6  ;;  %256 = vmatpush3.bf16.msra.mxu1 %v264_v6 }
  0x14   :  { %230 = vmatprep.subr.bf16.mxu0 %v265_v7  ;;  %249 = vmatprep.subr.bf16.mxu1 %v265_v7 }
  0x17   :  { %231 = vmatpush3.bf16.msra.mxu0 %v265_v7  ;;  %257 = vmatpush3.bf16.msra.mxu1 %v265_v7 }
  0x18   :  { %232 = vmatprep.subr.bf16.mxu0 %v266_v8  ;;  %250 = vmatprep.subr.bf16.mxu1 %v266_v8 }
  0x1b   :  { %233 = vmatpush3.bf16.msra.mxu0 %v266_v8  ;;  %258 = vmatpush3.bf16.msra.mxu1 %v266_v8 }
  0x1c   :  { %234 = vmatprep.subr.bf16.mxu0 %v267_v9  ;;  %251 = vmatprep.subr.bf16.mxu1 %v267_v9 }
  0x1f   :  { %235 = vmatpush3.bf16.msra.mxu0 %v267_v9  ;;  %259 = vmatpush3.bf16.msra.mxu1 %v267_v9 }
  0x22   :  { %237 = vmatmul.mubr.bf16.vlgmr.msra.gmra.mrb[0].mxu0 %v270_v10  ;;  %241 = vmatmul.mubr.bf16.vlgmr.msra.gmra.mrb[0].mxu1 %v271_v11 }
  0xf5   :  { %v238_v13 = vpop.f32.mrb[0].mxu0  ;;  %v242_v14 = vpop.f32.mrb[0].mxu1 }
  0xf6   :  { %v161_v15 = vadd.f32 %v238_v13, %v195_v12  ;;  %v177_v16 = vadd.f32 %v242_v14, %v195_v12  ;;  %v152_v17 = vpop.f32.mrb[1].mxu0  ;;  %v168_v18 = vpop.f32.mrb[1].mxu1 }
  0xf7   :  { %v153_v19 = vadd.f32 %v195_v12, %v152_v17  ;;  %v169_v20 = vadd.f32 %v195_v12, %v168_v18  ;;  %v239_v21 = vpop.f32.mrb[2].mxu0  ;;  %v243_v22 = vpop.f32.mrb[2].mxu1 }
  0xf8   :  { %185 = vst [vmem:[%s358_s3 + $0x10] sm:$0xff] %v161_v15  ;;  %189 = vst [vmem:[%s358_s3 + $0x30] sm:$0xff] %v177_v16  ;;  %v164_v23 = vadd.f32 %v239_v21, %v195_v12  ;;  %v180_v24 = vadd.f32 %v243_v22, %v195_v12  ;;  %v155_v25 = vpop.f32.mrb[3].mxu0  ;;  %v171_v26 = vpop.f32.mrb[3].mxu1 }
  0xf9   :  { %183 = vst [vmem:[%s358_s3] sm:$0xff] %v153_v19  ;;  %187 = vst [vmem:[%s358_s3 + $0x20] sm:$0xff] %v169_v20  ;;  %v156_v27 = vadd.f32 %v195_v12, %v155_v25  ;;  %v172_v28 = vadd.f32 %v195_v12, %v171_v26 }
  0xfa   :  { %186 = vst [vmem:[%s358_s3 + $0x18] sm:$0xff] %v164_v23  ;;  %190 = vst [vmem:[%s358_s3 + $0x38] sm:$0xff] %v180_v24 }
  0xfb   :  { %184 = vst [vmem:[%s358_s3 + $0x8] sm:$0xff] %v156_v27  ;;  %188 = vst [vmem:[%s358_s3 + $0x28] sm:$0xff] %v172_v28 }

// kernel: lstm_forward_seq.5
= control target key start
LH: loop header
LB: loop body
LE: loop exit
PB: predicated region body
PF: predicated region fallthrough
CT: control target
= control target key end

     0   :  { %s499_s1 = inlined_call_operand.vmem [shape: bf16[128,128], index: 1, kind: input, shape index: {}]   ;;  %s500_s0 = inlined_call_operand.vmem [shape: bf16[64,128], index: 0, kind: input, shape index: {}]   ;;  %s501_s2 = inlined_call_operand.vmem [shape: f32[1,128], index: 2, kind: input, shape index: {}]   ;;  %s502_s3 = inlined_call_operand.vmem [shape: f32[64,128], index: 3, kind: output, shape index: {}]  }
   0x1   :  { %v340_v0 = vld [vmem:[%s499_s1] sm:$0xff]   ;;  %v341_v1 = vld [vmem:[%s499_s1 + $0x8] sm:$0xff]   ;;  %v342_v2 = vld [vmem:[%s499_s1 + $0x10] sm:$0xff]  }
   0x2   :  { %300 = vmatprep.subr.bf16.mxu0 %v340_v0  ;;  %324 = vmatprep.subr.bf16.mxu1 %v340_v0  ;;  %v343_v3 = vld [vmem:[%s499_s1 + $0x18] sm:$0xff]   ;;  %v348_v4 = vld [vmem:[%s500_s0] sm:$0xff]   ;;  %v350_v5 = vld [vmem:[%s500_s0 + $0x10] sm:$0xff]  }
   0x3   :  { %301 = vmatpush3.bf16.msra.mxu0 %v340_v0  ;;  %332 = vmatpush3.bf16.msra.mxu1 %v340_v0  ;;  %v344_v6 = vld [vmem:[%s499_s1 + $0x20] sm:$0xff]   ;;  %v345_v7 = vld [vmem:[%s499_s1 + $0x28] sm:$0xff]   ;;  %v346_v8 = vld [vmem:[%s499_s1 + $0x30] sm:$0xff]  }
   0x4   :  { %302 = vmatprep.subr.bf16.mxu0 %v341_v1  ;;  %325 = vmatprep.subr.bf16.mxu1 %v341_v1  ;;  %v347_v9 = vld [vmem:[%s499_s1 + $0x38] sm:$0xff]   ;;  %v349_v10 = vld [vmem:[%s500_s0 + $0x8] sm:$0xff]   ;;  %v275_v12 = vld [vmem:[%s501_s2] ss:$0 sm:$0xff] }
   0x5   :  { %316 = vmatprep.mubr.bf16.mxu0 %v348_v4  ;;  %320 = vmatprep.mubr.bf16.mxu1 %v350_v5  ;;  %v351_v11 = vld [vmem:[%s500_s0 + $0x18] sm:$0xff]  }
   0x7   :  { %303 = vmatpush3.bf16.msra.mxu0 %v341_v1  ;;  %333 = vmatpush3.bf16.msra.mxu1 %v341_v1 }
   0x8   :  { %304 = vmatprep.subr.bf16.mxu0 %v342_v2  ;;  %326 = vmatprep.subr.bf16.mxu1 %v342_v2 }
   0xb   :  { %305 = vmatpush3.bf16.msra.mxu0 %v342_v2  ;;  %334 = vmatpush3.bf16.msra.mxu1 %v342_v2 }
   0xc   :  { %306 = vmatprep.subr.bf16.mxu0 %v343_v3  ;;  %327 = vmatprep.subr.bf16.mxu1 %v343_v3 }
   0xf   :  { %307 = vmatpush3.bf16.msra.mxu0 %v343_v3  ;;  %335 = vmatpush3.bf16.msra.mxu1 %v343_v3 }
  0x10   :  { %308 = vmatprep.subr.bf16.mxu0 %v344_v6  ;;  %328 = vmatprep.subr.bf16.mxu1 %v344_v6 }
  0x13   :  { %309 = vmatpush3.bf16.msra.mxu0 %v344_v6  ;;  %336 = vmatpush3.bf16.msra.mxu1 %v344_v6 }
  0x14   :  { %310 = vmatprep.subr.bf16.mxu0 %v345_v7  ;;  %329 = vmatprep.subr.bf16.mxu1 %v345_v7 }
  0x17   :  { %311 = vmatpush3.bf16.msra.mxu0 %v345_v7  ;;  %337 = vmatpush3.bf16.msra.mxu1 %v345_v7 }
  0x18   :  { %312 = vmatprep.subr.bf16.mxu0 %v346_v8  ;;  %330 = vmatprep.subr.bf16.mxu1 %v346_v8 }
  0x1b   :  { %313 = vmatpush3.bf16.msra.mxu0 %v346_v8  ;;  %338 = vmatpush3.bf16.msra.mxu1 %v346_v8 }
  0x1c   :  { %314 = vmatprep.subr.bf16.mxu0 %v347_v9  ;;  %331 = vmatprep.subr.bf16.mxu1 %v347_v9 }
  0x1f   :  { %315 = vmatpush3.bf16.msra.mxu0 %v347_v9  ;;  %339 = vmatpush3.bf16.msra.mxu1 %v347_v9 }
  0x22   :  { %317 = vmatmul.mubr.bf16.vlgmr.msra.gmra.mrb[0].mxu0 %v349_v10  ;;  %321 = vmatmul.mubr.bf16.vlgmr.msra.gmra.mrb[0].mxu1 %v351_v11 }
  0xf5   :  { %v318_v13 = vpop.f32.mrb[0].mxu0  ;;  %v322_v14 = vpop.f32.mrb[0].mxu1 }
  0xf6   :  { %v161_v15 = vadd.f32 %v318_v13, %v275_v12  ;;  %v152_v16 = vpop.f32.mrb[1].mxu0  ;;  %v168_v17 = vpop.f32.mrb[1].mxu1  ;;  %v177_v28 = vadd.f32 %v322_v14, %v275_v12 }
  0xf7   :  { %v153_v18 = vadd.f32 %v275_v12, %v152_v16  ;;  %v319_v19 = vpop.f32.mrb[2].mxu0  ;;  %v323_v20 = vpop.f32.mrb[2].mxu1  ;;  %v169_v23 = vadd.f32 %v275_v12, %v168_v17 }
  0xf8   :  { %187 = vmax.xlane.f32.xlu1 %v161_v15  ;;  %v155_v21 = vpop.f32.mrb[3].mxu0  ;;  %v171_v22 = vpop.f32.mrb[3].mxu1  ;;  %v164_v24 = vadd.f32 %v319_v19, %v275_v12  ;;  %v180_v27 = vadd.f32 %v323_v20, %v275_v12 }
  0xf9   :  { %183 = vmax.xlane.f32.xlu0 %v153_v18  ;;  %v172_v25 = vadd.f32 %v275_v12, %v171_v22  ;;  %v156_v26 = vadd.f32 %v275_v12, %v155_v21 }
  0xfc   :  { %189 = vmax.xlane.f32.xlu1 %v164_v24 }
  0xfd   :  { %191 = vmax.xlane.f32.xlu0 %v169_v23 }
 0x100   :  { %193 = vmax.xlane.f32.xlu1 %v172_v25 }
 0x101   :  { %185 = vmax.xlane.f32.xlu0 %v156_v26 }
 0x104   :  { %197 = vmax.xlane.f32.xlu1 %v180_v27 }
 0x105   :  { %195 = vmax.xlane.f32.xlu0 %v177_v28 }
 0x185   :  { %v188_v29 = vpop.xlane.xlu1 %187 }
 0x186   :  { %v443_v30 = vsub.f32 %v161_v15, %v188_v29  ;;  %v184_v31 = vpop.xlane.xlu0 %183 }
 0x187   :  { %v445_v32 = vsub.f32 %v153_v18, %v184_v31 }
 0x188   :  { %v211_v33 = vmul.f32 1.442695, %v443_v30 }
 0x189   :  { %v207_v34 = vmul.f32 1.442695, %v445_v32  ;;  %v190_v35 = vpop.xlane.xlu1 %189 }
 0x18a   :  { %352 = vpow2.f32 %v211_v33  ;;  %v449_v36 = vsub.f32 %v164_v24, %v190_v35  ;;  %v192_v37 = vpop.xlane.xlu0 %191 }
 0x18b   :  { %v451_v38 = vsub.f32 %v169_v23, %v192_v37  ;;  %354 = vpow2.f32 %v207_v34 }
 0x18c   :  { %v213_v39 = vmul.f32 1.442695, %v449_v36 }
 0x18d   :  { %v194_v40 = vpop.xlane.xlu1 %193  ;;  %v215_v41 = vmul.f32 1.442695, %v451_v38 }
 0x18e   :  { %356 = vpow2.f32 %v213_v39  ;;  %v455_v42 = vsub.f32 %v172_v25, %v194_v40  ;;  %v186_v43 = vpop.xlane.xlu0 %185 }
 0x18f   :  { %v457_v44 = vsub.f32 %v156_v26, %v186_v43  ;;  %358 = vpow2.f32 %v215_v41 }
 0x190   :  { %v217_v47 = vmul.f32 1.442695, %v455_v42 }
 0x191   :  { %v209_v45 = vmul.f32 1.442695, %v457_v44  ;;  %v198_v46 = vpop.xlane.xlu1 %197 }
 0x192   :  { %v196_v48 = vpop.xlane.xlu0 %195  ;;  %v461_v49 = vsub.f32 %v180_v27, %v198_v46 }
 0x193   :  { %360 = vpow2.f32 %v209_v45  ;;  %v463_v50 = vsub.f32 %v177_v28, %v196_v48 }
 0x194   :  { %v353_v51 = vpop.eup %352  ;;  %362 = vpow2.f32 %v217_v47  ;;  %v221_v54 = vmul.f32 1.442695, %v461_v49 }
 0x195   :  { %v219_v52 = vmul.f32 1.442695, %v463_v50  ;;  %227 = vadd.xlane.f32.xlu0 %v353_v51  ;;  %v355_v53 = vpop.eup %354 }
 0x197   :  { %364 = vpow2.f32 %v219_v52 }
 0x198   :  { %v357_v55 = vpop.eup %356  ;;  %366 = vpow2.f32 %v221_v54 }
 0x199   :  { %229 = vadd.xlane.f32.xlu1 %v357_v55  ;;  %223 = vadd.xlane.f32.xlu0 %v355_v53  ;;  %v359_v56 = vpop.eup %358 }
 0x19d   :  { %v361_v57 = vpop.eup %360  ;;  %231 = vadd.xlane.f32.xlu0 %v359_v56 }
 0x19e   :  { %225 = vadd.xlane.f32.xlu1 %v361_v57  ;;  %v363_v58 = vpop.eup %362 }
 0x1a1   :  { %v365_v59 = vpop.eup %364 }
 0x1a2   :  { %233 = vadd.xlane.f32.xlu1 %v363_v58  ;;  %235 = vadd.xlane.f32.xlu0 %v365_v59  ;;  %v367_v60 = vpop.eup %366 }
 0x1a6   :  { %237 = vadd.xlane.f32.xlu1 %v367_v60 }
 0x222   :  { %v228_v61 = vpop.xlane.xlu0 %227 }
 0x223   :  { %368 = vlog2.f32 %v228_v61 }
 0x226   :  { %v230_v62 = vpop.xlane.xlu1 %229  ;;  %v224_v63 = vpop.xlane.xlu0 %223 }
 0x227   :  { %370 = vlog2.f32 %v230_v62 }
 0x228   :  { %372 = vlog2.f32 %v224_v63 }
 0x22a   :  { %v232_v0 = vpop.xlane.xlu0 %231 }
 0x22b   :  { %374 = vlog2.f32 %v232_v0  ;;  %v226_v1 = vpop.xlane.xlu1 %225 }
 0x22c   :  { %376 = vlog2.f32 %v226_v1 }
 0x22d   :  { %v369_v2 = vpop.eup %368 }
 0x22e   :  { %v244_v3 = vmul.f32 0.6931472, %v369_v2 }
 0x22f   :  { %v234_v4 = vpop.xlane.xlu1 %233  ;;  %v236_v5 = vpop.xlane.xlu0 %235 }
 0x230   :  { %v257_v6 = vsub.f32 %v443_v30, %v244_v3  ;;  %378 = vlog2.f32 %v234_v4 }
 0x231   :  { %v371_v7 = vpop.eup %370  ;;  %380 = vlog2.f32 %v236_v5 }
 0x232   :  { %v373_v8 = vpop.eup %372  ;;  %265 = vst [vmem:[%s502_s3 + $0x10] sm:$0xff] %v257_v6  ;;  %v246_v9 = vmul.f32 0.6931472, %v371_v7 }
 0x233   :  { %v240_v10 = vmul.f32 0.6931472, %v373_v8  ;;  %v238_v11 = vpop.xlane.xlu1 %237 }
 0x234   :  { %v258_v12 = vsub.f32 %v449_v36, %v246_v9  ;;  %382 = vlog2.f32 %v238_v11 }
 0x235   :  { %v375_v13 = vpop.eup %374  ;;  %v255_v14 = vsub.f32 %v445_v32, %v240_v10 }
 0x236   :  { %v377_v15 = vpop.eup %376  ;;  %266 = vst [vmem:[%s502_s3 + $0x18] sm:$0xff] %v258_v12  ;;  %v248_v16 = vmul.f32 0.6931472, %v375_v13 }
 0x237   :  { %263 = vst [vmem:[%s502_s3] sm:$0xff] %v255_v14  ;;  %v242_v17 = vmul.f32 0.6931472, %v377_v15 }
 0x238   :  { %v259_v18 = vsub.f32 %v451_v38, %v248_v16 }
 0x239   :  { %v256_v19 = vsub.f32 %v457_v44, %v242_v17 }
 0x23a   :  { %v379_v20 = vpop.eup %378  ;;  %267 = vst [vmem:[%s502_s3 + $0x20] sm:$0xff] %v259_v18 }
 0x23b   :  { %v381_v21 = vpop.eup %380  ;;  %264 = vst [vmem:[%s502_s3 + $0x8] sm:$0xff] %v256_v19  ;;  %v250_v22 = vmul.f32 0.6931472, %v379_v20 }
 0x23c   :  { %v252_v23 = vmul.f32 0.6931472, %v381_v21 }
 0x23d   :  { %v260_v24 = vsub.f32 %v455_v42, %v250_v22 }
 0x23e   :  { %v383_v25 = vpop.eup %382  ;;  %v261_v26 = vsub.f32 %v463_v50, %v252_v23 }
 0x23f   :  { %268 = vst [vmem:[%s502_s3 + $0x28] sm:$0xff] %v260_v24  ;;  %v254_v27 = vmul.f32 0.6931472, %v383_v25 }
 0x240   :  { %269 = vst [vmem:[%s502_s3 + $0x30] sm:$0xff] %v261_v26 }
 0x241   :  { %v262_v28 = vsub.f32 %v461_v49, %v254_v27 }
 0x243   :  { %270 = vst [vmem:[%s502_s3 + $0x38] sm:$0xff] %v262_v28 }

// kernel: lstm_forward_seq.4
= control target key start
LH: loop header
LB: loop body
LE: loop exit
PB: predicated region body
PF: predicated region fallthrough
CT: control target
= control target key end

     0   :  { %v908_v0 = vmov 0.0   ;;  %vm909_vm0 = vmmov 0   ;;  %s1189_s3 = inlined_call_operand.vmem [shape: bf16[128,128], index: 3, kind: input, shape index: {}]   ;;  %s1190_s1 = inlined_call_operand.vmem [shape: f32[8,128], index: 1, kind: input, shape index: {}, may-alias: {1,5}]   ;;  %s1191_s0 = inlined_call_operand.vmem [shape: f32[8,8,128], index: 0, kind: input, shape index: {}]   ;;  %s1192_s2 = inlined_call_operand.vmem [shape: f32[8,128], index: 2, kind: input, shape index: {}, may-alias: {2,6}]   ;;  %s1193_s4 = inlined_call_operand.vmem [shape: bf16[8,8,128], index: 4, kind: output, shape index: {0}]   ;;  %s1194_s6 = inlined_call_operand.vmem [shape: f32[8,128], index: 6, kind: output, shape index: {2}, may-alias: {2,6}]   ;;  %s1195_s5 = inlined_call_operand.vmem [shape: f32[8,128], index: 5, kind: output, shape index: {1}, may-alias: {1,5}]  }
   0x1   :  { %674 = vmatprep.subr.bf16.mxu0 %v908_v0  ;;  %v949_v1 = vld [vmem:[%s1189_s3] sm:$0xff]   ;;  %690 = vmatprep.mubr.msk.bf16.mxu0 %vm909_vm0, %v908_v0  ;;  %v960_v2 = vld [vmem:[%s1189_s3 + $0x8] sm:$0xff]   ;;  %v969_v3 = vld [vmem:[%s1189_s3 + $0x10] sm:$0xff]  }
   0x2   :  { %694 = vmatprep.subr.bf16.mxu1 %v908_v0  ;;  %710 = vmatprep.mubr.msk.bf16.mxu1 %vm909_vm0, %v908_v0  ;;  %v978_v4 = vld [vmem:[%s1189_s3 + $0x18] sm:$0xff]   ;;  %v987_v5 = vld [vmem:[%s1189_s3 + $0x20] sm:$0xff]   ;;  %v996_v6 = vld [vmem:[%s1189_s3 + $0x28] sm:$0xff]  }
   0x3   :  { %675 = vmatpush3.bf16.msra.mxu0 %v949_v1  ;;  %695 = vmatpush3.bf16.msra.mxu1 %v949_v1  ;;  %v1005_v7 = vld [vmem:[%s1189_s3 + $0x30] sm:$0xff]   ;;  %v1014_v8 = vld [vmem:[%s1189_s3 + $0x38] sm:$0xff]   ;;  %v25_v9 = vld [vmem:[%s1190_s1] sm:$0xff] }
   0x4   :  { %676 = vmatprep.subr.bf16.mxu0 %v908_v0  ;;  %696 = vmatprep.subr.bf16.mxu1 %v908_v0  ;;  %v48_v10 = vpack.c.bf16 %v25_v9, %v25_v9  ;;  %v47_v11 = vld [vmem:[%s1191_s0] sm:$0xff]  ;;  %v581_v29 = vld [vmem:[%s1191_s0 + $0x8] sm:$0xff]  ;;  %v584_v46 = vld [vmem:[%s1191_s0 + $0x10] sm:$0xff] }
   0x5   :  { %v27_v20 = vld [vmem:[%s1192_s2] sm:$0xff]  ;;  %v587_v63 = vld [vmem:[%s1191_s0 + $0x18] sm:$0xff] }
   0x7   :  { %677 = vmatpush3.bf16.msra.mxu0 %v960_v2  ;;  %697 = vmatpush3.bf16.msra.mxu1 %v960_v2 }
   0x8   :  { %678 = vmatprep.subr.bf16.mxu0 %v908_v0  ;;  %698 = vmatprep.subr.bf16.mxu1 %v908_v0 }
   0xb   :  { %679 = vmatpush3.bf16.msra.mxu0 %v969_v3  ;;  %699 = vmatpush3.bf16.msra.mxu1 %v969_v3 }
   0xc   :  { %680 = vmatprep.subr.bf16.mxu0 %v908_v0  ;;  %700 = vmatprep.subr.bf16.mxu1 %v908_v0 }
   0xf   :  { %681 = vmatpush3.bf16.msra.mxu0 %v978_v4  ;;  %701 = vmatpush3.bf16.msra.mxu1 %v978_v4 }
  0x10   :  { %682 = vmatprep.subr.bf16.mxu0 %v908_v0  ;;  %702 = vmatprep.subr.bf16.mxu1 %v908_v0 }
  0x13   :  { %683 = vmatpush3.bf16.msra.mxu0 %v987_v5  ;;  %703 = vmatpush3.bf16.msra.mxu1 %v987_v5 }
  0x14   :  { %684 = vmatprep.subr.bf16.mxu0 %v908_v0  ;;  %704 = vmatprep.subr.bf16.mxu1 %v908_v0 }
  0x17   :  { %685 = vmatpush3.bf16.msra.mxu0 %v996_v6  ;;  %705 = vmatpush3.bf16.msra.mxu1 %v996_v6 }
  0x18   :  { %686 = vmatprep.subr.bf16.mxu0 %v908_v0  ;;  %706 = vmatprep.subr.bf16.mxu1 %v908_v0 }
  0x1b   :  { %687 = vmatpush3.bf16.msra.mxu0 %v1005_v7  ;;  %707 = vmatpush3.bf16.msra.mxu1 %v1005_v7 }
  0x1c   :  { %688 = vmatprep.subr.bf16.mxu0 %v908_v0  ;;  %708 = vmatprep.subr.bf16.mxu1 %v908_v0 }
  0x1f   :  { %689 = vmatpush3.bf16.msra.mxu0 %v1014_v8  ;;  %709 = vmatpush3.bf16.msra.mxu1 %v1014_v8 }
  0x20   :  { %714 = vmatprep.subr.bf16.mxu0 %v908_v0  ;;  %734 = vmatprep.subr.bf16.mxu1 %v908_v0 }
  0x22   :  { %691 = vmatmul.mubr.bf16.vlgmr.msra.gmra.mrb[0].mxu0 %v48_v10 }
  0x23   :  { %715 = vmatpush3.bf16.msra.mxu0 %v949_v1  ;;  %730 = vmatprep.mubr.msk.bf16.mxu0 %vm909_vm0, %v908_v0 }
  0x24   :  { %716 = vmatprep.subr.bf16.mxu0 %v908_v0 }
  0x27   :  { %717 = vmatpush3.bf16.msra.mxu0 %v960_v2 }
  0x28   :  { %718 = vmatprep.subr.bf16.mxu0 %v908_v0 }
  0x2b   :  { %719 = vmatpush3.bf16.msra.mxu0 %v969_v3 }
  0x2c   :  { %720 = vmatprep.subr.bf16.mxu0 %v908_v0 }
  0x2f   :  { %721 = vmatpush3.bf16.msra.mxu0 %v978_v4 }
  0x30   :  { %722 = vmatprep.subr.bf16.mxu0 %v908_v0 }
  0x33   :  { %723 = vmatpush3.bf16.msra.mxu0 %v987_v5 }
  0x34   :  { %724 = vmatprep.subr.bf16.mxu0 %v908_v0 }
  0x37   :  { %725 = vmatpush3.bf16.msra.mxu0 %v996_v6 }
  0x38   :  { %726 = vmatprep.subr.bf16.mxu0 %v908_v0 }
  0x3b   :  { %727 = vmatpush3.bf16.msra.mxu0 %v1005_v7 }
  0x3c   :  { %728 = vmatprep.subr.bf16.mxu0 %v908_v0 }
  0x3f   :  { %729 = vmatpush3.bf16.msra.mxu0 %v1014_v8 }
  0x40   :  { %754 = vmatprep.subr.bf16.mxu0 %v908_v0 }
  0xf5   :  { %v131_v12 = vpop.f32.mrb[0].mxu0 }
  0xf6   :  { %v137_v13 = vadd.f32 %v131_v12, %v47_v11  ;;  %v692_v14 = vpop.f32.mrb[1].mxu0 }
  0xf7   :  { %v134_v15 = vpop.f32.mrb[2].mxu0 }
  0xf8   :  { %v580_v16 = vmul.f32 -1.442695, %v137_v13  ;;  %v693_v17 = vpop.f32.mrb[3].mxu0 }
  0xfa   :  { %844 = vpow2.f32 %v580_v16 }
  0xfb   :  { %846 = vtanh.f32 %v137_v13 }
 0x104   :  { %v845_v18 = vpop.eup %844 }
 0x105   :  { %v141_v19 = vadd.f32 1.0, %v845_v18  ;;  %v847_v21 = vpop.eup %846 }
 0x107   :  { %848 = vrcp.f32 %v141_v19 }
 0x111   :  { %v849_v22 = vpop.eup %848 }
 0x112   :  { %v144_v23 = vmul.f32 %v849_v22, %v27_v20  ;;  %v146_v24 = vmul.f32 %v849_v22, %v847_v21 }
 0x114   :  { %v147_v25 = vadd.f32 %v146_v24, %v144_v23 }
 0x116   :  { %850 = vtanh.f32 %v147_v25 }
 0x120   :  { %v851_v26 = vpop.eup %850 }
 0x121   :  { %v149_v27 = vmul.f32 %v851_v26, %v849_v22 }
 0x123   :  { %v150_v28 = vpack.c.bf16 %v149_v27, %v149_v27 }
 0x125   :  { %151 = vst [vmem:[%s1193_s4] sm:$0xf] %v150_v28  ;;  %711 = vmatmul.mubr.bf16.vlgmr.msra.gmra.mrb[0].mxu1 %v150_v28 }
 0x126   :  { %735 = vmatpush3.bf16.msra.mxu1 %v949_v1  ;;  %750 = vmatprep.mubr.msk.bf16.mxu1 %vm909_vm0, %v908_v0 }
 0x127   :  { %736 = vmatprep.subr.bf16.mxu1 %v908_v0 }
 0x12a   :  { %737 = vmatpush3.bf16.msra.mxu1 %v960_v2 }
 0x12b   :  { %738 = vmatprep.subr.bf16.mxu1 %v908_v0 }
 0x12e   :  { %739 = vmatpush3.bf16.msra.mxu1 %v969_v3 }
 0x12f   :  { %740 = vmatprep.subr.bf16.mxu1 %v908_v0 }
 0x132   :  { %741 = vmatpush3.bf16.msra.mxu1 %v978_v4 }
 0x133   :  { %742 = vmatprep.subr.bf16.mxu1 %v908_v0 }
 0x136   :  { %743 = vmatpush3.bf16.msra.mxu1 %v987_v5 }
 0x137   :  { %744 = vmatprep.subr.bf16.mxu1 %v908_v0 }
 0x13a   :  { %745 = vmatpush3.bf16.msra.mxu1 %v996_v6 }
 0x13b   :  { %746 = vmatprep.subr.bf16.mxu1 %v908_v0 }
 0x13e   :  { %747 = vmatpush3.bf16.msra.mxu1 %v1005_v7 }
 0x13f   :  { %748 = vmatprep.subr.bf16.mxu1 %v908_v0 }
 0x142   :  { %749 = vmatpush3.bf16.msra.mxu1 %v1014_v8 }
 0x143   :  { %774 = vmatprep.subr.bf16.mxu1 %v908_v0 }
 0x1f8   :  { %v188_v30 = vpop.f32.mrb[0].mxu1 }
 0x1f9   :  { %v194_v31 = vadd.f32 %v581_v29, %v188_v30  ;;  %v712_v32 = vpop.f32.mrb[1].mxu1 }
 0x1fa   :  { %v191_v33 = vpop.f32.mrb[2].mxu1 }
 0x1fb   :  { %v582_v34 = vmul.f32 -1.442695, %v194_v31  ;;  %v713_v35 = vpop.f32.mrb[3].mxu1 }
 0x1fd   :  { %852 = vpow2.f32 %v582_v34 }
 0x1fe   :  { %854 = vtanh.f32 %v194_v31 }
 0x207   :  { %v853_v36 = vpop.eup %852 }
 0x208   :  { %v198_v37 = vadd.f32 1.0, %v853_v36  ;;  %v855_v38 = vpop.eup %854 }
 0x20a   :  { %856 = vrcp.f32 %v198_v37 }
 0x214   :  { %v857_v39 = vpop.eup %856 }
 0x215   :  { %v201_v40 = vmul.f32 %v857_v39, %v147_v25  ;;  %v203_v41 = vmul.f32 %v857_v39, %v855_v38  ;;  %v590_v25 = vld [vmem:[%s1191_s0 + $0x20] sm:$0xff] }
 0x217   :  { %v204_v42 = vadd.f32 %v203_v41, %v201_v40 }
 0x219   :  { %858 = vtanh.f32 %v204_v42 }
 0x223   :  { %v859_v43 = vpop.eup %858 }
 0x224   :  { %v206_v44 = vmul.f32 %v859_v43, %v857_v39 }
 0x226   :  { %v207_v45 = vpack.c.bf16 %v206_v44, %v206_v44 }
 0x228   :  { %583 = vst [vmem:[%s1193_s4 + $0x4] sm:$0xf] %v207_v45  ;;  %731 = vmatmul.mubr.bf16.vlgmr.msra.gmra.mrb[4].mxu0 %v207_v45 }
 0x229   :  { %755 = vmatpush3.bf16.msra.mxu0 %v949_v1  ;;  %770 = vmatprep.mubr.msk.bf16.mxu0 %vm909_vm0, %v908_v0 }
 0x22a   :  { %756 = vmatprep.subr.bf16.mxu0 %v908_v0 }
 0x22d   :  { %757 = vmatpush3.bf16.msra.mxu0 %v960_v2 }
 0x22e   :  { %758 = vmatprep.subr.bf16.mxu0 %v908_v0 }
 0x231   :  { %759 = vmatpush3.bf16.msra.mxu0 %v969_v3 }
 0x232   :  { %760 = vmatprep.subr.bf16.mxu0 %v908_v0 }
 0x235   :  { %761 = vmatpush3.bf16.msra.mxu0 %v978_v4 }
 0x236   :  { %762 = vmatprep.subr.bf16.mxu0 %v908_v0 }
 0x239   :  { %763 = vmatpush3.bf16.msra.mxu0 %v987_v5 }
 0x23a   :  { %764 = vmatprep.subr.bf16.mxu0 %v908_v0 }
 0x23d   :  { %765 = vmatpush3.bf16.msra.mxu0 %v996_v6 }
 0x23e   :  { %766 = vmatprep.subr.bf16.mxu0 %v908_v0 }
 0x241   :  { %767 = vmatpush3.bf16.msra.mxu0 %v1005_v7 }
 0x242   :  { %768 = vmatprep.subr.bf16.mxu0 %v908_v0 }
 0x245   :  { %769 = vmatpush3.bf16.msra.mxu0 %v1014_v8 }
 0x246   :  { %794 = vmatprep.subr.bf16.mxu0 %v908_v0 }
 0x2fb   :  { %v246_v47 = vpop.f32.mrb[4].mxu0 }
 0x2fc   :  { %v252_v48 = vadd.f32 %v584_v46, %v246_v47  ;;  %v732_v49 = vpop.f32.mrb[5].mxu0 }
 0x2fd   :  { %v249_v50 = vpop.f32.mrb[6].mxu0 }
 0x2fe   :  { %v585_v51 = vmul.f32 -1.442695, %v252_v48  ;;  %v733_v52 = vpop.f32.mrb[7].mxu0  ;;  %v596_v50 = vld [vmem:[%s1191_s0 + $0x30] sm:$0xff] }
 0x300   :  { %860 = vpow2.f32 %v585_v51 }
 0x301   :  { %862 = vtanh.f32 %v252_v48 }
 0x30a   :  { %v861_v53 = vpop.eup %860 }
 0x30b   :  { %v256_v54 = vadd.f32 1.0, %v861_v53  ;;  %v863_v55 = vpop.eup %862 }
 0x30d   :  { %864 = vrcp.f32 %v256_v54 }
 0x317   :  { %v865_v56 = vpop.eup %864 }
 0x318   :  { %v259_v57 = vmul.f32 %v865_v56, %v204_v42  ;;  %v261_v58 = vmul.f32 %v865_v56, %v863_v55 }
 0x31a   :  { %v262_v59 = vadd.f32 %v261_v58, %v259_v57 }
 0x31c   :  { %866 = vtanh.f32 %v262_v59 }
 0x326   :  { %v867_v60 = vpop.eup %866 }
 0x327   :  { %v264_v61 = vmul.f32 %v867_v60, %v865_v56 }
 0x329   :  { %v265_v62 = vpack.c.bf16 %v264_v61, %v264_v61 }
 0x32b   :  { %586 = vst [vmem:[%s1193_s4 + $0x8] sm:$0xf] %v265_v62  ;;  %751 = vmatmul.mubr.bf16.vlgmr.msra.gmra.mrb[4].mxu1 %v265_v62 }
 0x32c   :  { %775 = vmatpush3.bf16.msra.mxu1 %v949_v1  ;;  %790 = vmatprep.mubr.msk.bf16.mxu1 %vm909_vm0, %v908_v0 }
 0x32d   :  { %776 = vmatprep.subr.bf16.mxu1 %v908_v0 }
 0x330   :  { %777 = vmatpush3.bf16.msra.mxu1 %v960_v2 }
 0x331   :  { %778 = vmatprep.subr.bf16.mxu1 %v908_v0 }
 0x334   :  { %779 = vmatpush3.bf16.msra.mxu1 %v969_v3 }
 0x335   :  { %780 = vmatprep.subr.bf16.mxu1 %v908_v0 }
 0x338   :  { %781 = vmatpush3.bf16.msra.mxu1 %v978_v4 }
 0x339   :  { %782 = vmatprep.subr.bf16.mxu1 %v908_v0 }
 0x33c   :  { %783 = vmatpush3.bf16.msra.mxu1 %v987_v5 }
 0x33d   :  { %784 = vmatprep.subr.bf16.mxu1 %v908_v0 }
 0x340   :  { %785 = vmatpush3.bf16.msra.mxu1 %v996_v6 }
 0x341   :  { %786 = vmatprep.subr.bf16.mxu1 %v908_v0 }
 0x344   :  { %787 = vmatpush3.bf16.msra.mxu1 %v1005_v7 }
 0x345   :  { %788 = vmatprep.subr.bf16.mxu1 %v908_v0 }
 0x348   :  { %789 = vmatpush3.bf16.msra.mxu1 %v1014_v8 }
 0x349   :  { %814 = vmatprep.subr.bf16.mxu1 %v908_v0 }
 0x3fe   :  { %v304_v9 = vpop.f32.mrb[4].mxu1 }
 0x3ff   :  { %v310_v10 = vadd.f32 %v587_v63, %v304_v9  ;;  %v752_v11 = vpop.f32.mrb[5].mxu1 }
 0x400   :  { %v307_v12 = vpop.f32.mrb[6].mxu1 }
 0x401   :  { %v588_v13 = vmul.f32 -1.442695, %v310_v10  ;;  %v753_v14 = vpop.f32.mrb[7].mxu1  ;;  %v599_v12 = vld [vmem:[%s1191_s0 + $0x38] sm:$0xff] }
 0x403   :  { %868 = vpow2.f32 %v588_v13 }
 0x404   :  { %870 = vtanh.f32 %v310_v10 }
 0x40d   :  { %v869_v15 = vpop.eup %868 }
 0x40e   :  { %v314_v16 = vadd.f32 1.0, %v869_v15  ;;  %v871_v17 = vpop.eup %870 }
 0x410   :  { %872 = vrcp.f32 %v314_v16 }
 0x41a   :  { %v873_v18 = vpop.eup %872 }
 0x41b   :  { %v317_v19 = vmul.f32 %v873_v18, %v262_v59  ;;  %v319_v20 = vmul.f32 %v873_v18, %v871_v17 }
 0x41d   :  { %v320_v21 = vadd.f32 %v319_v20, %v317_v19 }
 0x41f   :  { %874 = vtanh.f32 %v320_v21 }
 0x429   :  { %v875_v22 = vpop.eup %874 }
 0x42a   :  { %v322_v23 = vmul.f32 %v875_v22, %v873_v18 }
 0x42c   :  { %v323_v24 = vpack.c.bf16 %v322_v23, %v322_v23 }
 0x42e   :  { %589 = vst [vmem:[%s1193_s4 + $0xc] sm:$0xf] %v323_v24  ;;  %771 = vmatmul.mubr.bf16.vlgmr.msra.gmra.mrb[8].mxu0 %v323_v24 }
 0x42f   :  { %795 = vmatpush3.bf16.msra.mxu0 %v949_v1  ;;  %810 = vmatprep.mubr.msk.bf16.mxu0 %vm909_vm0, %v908_v0 }
 0x430   :  { %796 = vmatprep.subr.bf16.mxu0 %v908_v0 }
 0x433   :  { %797 = vmatpush3.bf16.msra.mxu0 %v960_v2 }
 0x434   :  { %798 = vmatprep.subr.bf16.mxu0 %v908_v0 }
 0x437   :  { %799 = vmatpush3.bf16.msra.mxu0 %v969_v3 }
 0x438   :  { %800 = vmatprep.subr.bf16.mxu0 %v908_v0 }
 0x43b   :  { %801 = vmatpush3.bf16.msra.mxu0 %v978_v4 }
 0x43c   :  { %802 = vmatprep.subr.bf16.mxu0 %v908_v0 }
 0x43f   :  { %803 = vmatpush3.bf16.msra.mxu0 %v987_v5 }
 0x440   :  { %804 = vmatprep.subr.bf16.mxu0 %v908_v0 }
 0x443   :  { %805 = vmatpush3.bf16.msra.mxu0 %v996_v6 }
 0x444   :  { %806 = vmatprep.subr.bf16.mxu0 %v908_v0 }
 0x447   :  { %807 = vmatpush3.bf16.msra.mxu0 %v1005_v7 }
 0x448   :  { %808 = vmatprep.subr.bf16.mxu0 %v908_v0 }
 0x44b   :  { %809 = vmatpush3.bf16.msra.mxu0 %v1014_v8 }
 0x501   :  { %v362_v26 = vpop.f32.mrb[8].mxu0 }
 0x502   :  { %v368_v27 = vadd.f32 %v590_v25, %v362_v26  ;;  %v772_v28 = vpop.f32.mrb[9].mxu0 }
 0x503   :  { %v365_v29 = vpop.f32.mrb[10].mxu0 }
 0x504   :  { %v591_v30 = vmul.f32 -1.442695, %v368_v27  ;;  %v773_v31 = vpop.f32.mrb[11].mxu0 }
 0x506   :  { %876 = vpow2.f32 %v591_v30 }
 0x507   :  { %878 = vtanh.f32 %v368_v27 }
 0x510   :  { %v877_v32 = vpop.eup %876 }
 0x511   :  { %v372_v33 = vadd.f32 1.0, %v877_v32  ;;  %v879_v34 = vpop.eup %878 }
 0x513   :  { %880 = vrcp.f32 %v372_v33 }
 0x51d   :  { %v881_v35 = vpop.eup %880 }
 0x51e   :  { %v375_v36 = vmul.f32 %v881_v35, %v320_v21  ;;  %v377_v37 = vmul.f32 %v881_v35, %v879_v34 }
 0x520   :  { %v378_v38 = vadd.f32 %v377_v37, %v375_v36 }
 0x522   :  { %882 = vtanh.f32 %v378_v38 }
 0x52c   :  { %v883_v39 = vpop.eup %882 }
 0x52d   :  { %v380_v40 = vmul.f32 %v883_v39, %v881_v35 }
 0x52f   :  { %v381_v41 = vpack.c.bf16 %v380_v40, %v380_v40 }
 0x531   :  { %592 = vst [vmem:[%s1193_s4 + $0x10] sm:$0xf] %v381_v41  ;;  %791 = vmatmul.mubr.bf16.vlgmr.msra.gmra.mrb[8].mxu1 %v381_v41 }
 0x532   :  { %815 = vmatpush3.bf16.msra.mxu1 %v949_v1  ;;  %830 = vmatprep.mubr.msk.bf16.mxu1 %vm909_vm0, %v908_v0  ;;  %v593_v1 = vld [vmem:[%s1191_s0 + $0x28] sm:$0xff] }
 0x533   :  { %816 = vmatprep.subr.bf16.mxu1 %v908_v0 }
 0x536   :  { %817 = vmatpush3.bf16.msra.mxu1 %v960_v2 }
 0x537   :  { %818 = vmatprep.subr.bf16.mxu1 %v908_v0 }
 0x53a   :  { %819 = vmatpush3.bf16.msra.mxu1 %v969_v3 }
 0x53b   :  { %820 = vmatprep.subr.bf16.mxu1 %v908_v0 }
 0x53e   :  { %821 = vmatpush3.bf16.msra.mxu1 %v978_v4 }
 0x53f   :  { %822 = vmatprep.subr.bf16.mxu1 %v908_v0 }
 0x542   :  { %823 = vmatpush3.bf16.msra.mxu1 %v987_v5 }
 0x543   :  { %824 = vmatprep.subr.bf16.mxu1 %v908_v0 }
 0x546   :  { %825 = vmatpush3.bf16.msra.mxu1 %v996_v6 }
 0x547   :  { %826 = vmatprep.subr.bf16.mxu1 %v908_v0 }
 0x54a   :  { %827 = vmatpush3.bf16.msra.mxu1 %v1005_v7 }
 0x54b   :  { %828 = vmatprep.subr.bf16.mxu1 %v908_v0 }
 0x54e   :  { %829 = vmatpush3.bf16.msra.mxu1 %v1014_v8 }
 0x604   :  { %v420_v2 = vpop.f32.mrb[8].mxu1 }
 0x605   :  { %v426_v3 = vadd.f32 %v593_v1, %v420_v2  ;;  %v792_v4 = vpop.f32.mrb[9].mxu1 }
 0x606   :  { %v423_v5 = vpop.f32.mrb[10].mxu1 }
 0x607   :  { %v594_v42 = vmul.f32 -1.442695, %v426_v3  ;;  %v793_v43 = vpop.f32.mrb[11].mxu1 }
 0x609   :  { %884 = vpow2.f32 %v594_v42 }
 0x60a   :  { %886 = vtanh.f32 %v426_v3 }
 0x613   :  { %v885_v6 = vpop.eup %884 }
 0x614   :  { %v430_v44 = vadd.f32 1.0, %v885_v6  ;;  %v887_v7 = vpop.eup %886 }
 0x616   :  { %888 = vrcp.f32 %v430_v44 }
 0x620   :  { %v889_v45 = vpop.eup %888 }
 0x621   :  { %v433_v0 = vmul.f32 %v889_v45, %v378_v38  ;;  %v435_v46 = vmul.f32 %v889_v45, %v887_v7 }
 0x623   :  { %v436_v8 = vadd.f32 %v435_v46, %v433_v0 }
 0x625   :  { %890 = vtanh.f32 %v436_v8 }
 0x62f   :  { %v891_v47 = vpop.eup %890 }
 0x630   :  { %v438_v48 = vmul.f32 %v891_v47, %v889_v45 }
 0x632   :  { %v439_v49 = vpack.c.bf16 %v438_v48, %v438_v48 }
 0x634   :  { %595 = vst [vmem:[%s1193_s4 + $0x14] sm:$0xf] %v439_v49  ;;  %811 = vmatmul.mubr.bf16.vlgmr.msra.gmra.mrb[12].mxu0 %v439_v49 }
 0x707   :  { %v478_v51 = vpop.f32.mrb[12].mxu0 }
 0x708   :  { %v484_v52 = vadd.f32 %v596_v50, %v478_v51  ;;  %v812_v53 = vpop.f32.mrb[13].mxu0 }
 0x709   :  { %v481_v54 = vpop.f32.mrb[14].mxu0 }
 0x70a   :  { %v597_v55 = vmul.f32 -1.442695, %v484_v52  ;;  %v813_v56 = vpop.f32.mrb[15].mxu0 }
 0x70c   :  { %892 = vpow2.f32 %v597_v55 }
 0x70d   :  { %894 = vtanh.f32 %v484_v52 }
 0x716   :  { %v893_v57 = vpop.eup %892 }
 0x717   :  { %v488_v58 = vadd.f32 1.0, %v893_v57  ;;  %v895_v59 = vpop.eup %894 }
 0x719   :  { %896 = vrcp.f32 %v488_v58 }
 0x723   :  { %v897_v60 = vpop.eup %896 }
 0x724   :  { %v491_v61 = vmul.f32 %v897_v60, %v436_v8  ;;  %v493_v62 = vmul.f32 %v897_v60, %v895_v59 }
 0x726   :  { %v494_v63 = vadd.f32 %v493_v62, %v491_v61 }
 0x728   :  { %898 = vtanh.f32 %v494_v63 }
 0x732   :  { %v899_v9 = vpop.eup %898 }
 0x733   :  { %v496_v10 = vmul.f32 %v899_v9, %v897_v60 }
 0x735   :  { %v497_v11 = vpack.c.bf16 %v496_v10, %v496_v10 }
 0x737   :  { %598 = vst [vmem:[%s1193_s4 + $0x18] sm:$0xf] %v497_v11  ;;  %831 = vmatmul.mubr.bf16.vlgmr.msra.gmra.mrb[12].mxu1 %v497_v11 }
 0x80a   :  { %v536_v13 = vpop.f32.mrb[12].mxu1 }
 0x80b   :  { %v542_v14 = vadd.f32 %v599_v12, %v536_v13  ;;  %v832_v15 = vpop.f32.mrb[13].mxu1 }
 0x80c   :  { %v539_v16 = vpop.f32.mrb[14].mxu1 }
 0x80d   :  { %v600_v17 = vmul.f32 -1.442695, %v542_v14  ;;  %v833_v18 = vpop.f32.mrb[15].mxu1 }
 0x80f   :  { %900 = vpow2.f32 %v600_v17 }
 0x810   :  { %902 = vtanh.f32 %v542_v14 }
 0x819   :  { %v901_v19 = vpop.eup %900 }
 0x81a   :  { %v546_v20 = vadd.f32 1.0, %v901_v19  ;;  %v903_v21 = vpop.eup %902 }
 0x81c   :  { %904 = vrcp.f32 %v546_v20 }
 0x826   :  { %v905_v22 = vpop.eup %904 }
 0x827   :  { %v549_v23 = vmul.f32 %v905_v22, %v494_v63  ;;  %v551_v24 = vmul.f32 %v905_v22, %v903_v21 }
 0x829   :  { %v552_v25 = vadd.f32 %v551_v24, %v549_v23 }
 0x82b   :  { %906 = vtanh.f32 %v552_v25  ;;  %559 = vst [vmem:[%s1194_s6] sm:$0xff] %v552_v25 }
 0x835   :  { %v907_v26 = vpop.eup %906 }
 0x836   :  { %v554_v27 = vmul.f32 %v907_v26, %v905_v22 }
 0x838   :  { %v555_v28 = vpack.c.bf16 %v554_v27, %v554_v27  ;;  %558 = vst [vmem:[%s1195_s5] sm:$0xff] %v554_v27 }
 0x83a   :  { %601 = vst [vmem:[%s1193_s4 + $0x1c] sm:$0xf] %v555_v28 }

</bundles_post_ra>
